<compile_context>
chip_gen: v7x
topology: tpu7x:2x2x1
jax: 0.10.0
libtpu: 0.0.40
codegen_flags: <defaults>
</compile_context>

<pallas_src>
import jax
import jax.numpy as jnp
from jax.experimental import pallas as pl
from jax.experimental.pallas import tpu as pltpu  # noqa: F401  (TPU backend)

# ----------------- synthetic-BERT config (small shapes) -----------------
VOCAB = 100
TYPE_VOCAB = 2
MAX_POS = 64
B = 2            # batch
S = 8            # sequence length
H = 32           # hidden size
NH = 2           # attention heads
HD = H // NH     # head dim
I = 64           # true intermediate (FFN) size
I_PAD = 128      # lane-dense padded FFN size (zero-padded, numerically exact)
NLAYERS = 2
F = 4            # feature_size
FEAT_OUT = 32    # feature_layer output width
BS = B * S
LN_EPS = 1e-12
MASK_NEG = -1e9


# ----------------------------- shared math -----------------------------

def _gelu(x):
    # TODO(synk): HF BERT default act is erf-gelu; tanh-approx used for robust TPU lowering.
    return jax.nn.gelu(x, approximate=True)


def _layernorm(x, g, b):
    mu = jnp.mean(x, axis=-1, keepdims=True)
    var = jnp.mean((x - mu) ** 2, axis=-1, keepdims=True)
    return (x - mu) * jax.lax.rsqrt(var + LN_EPS) * g + b


def _bdot(a, b):
    # bf16 operands on the MXU, f32 accumulation.
    return jnp.dot(a.astype(jnp.bfloat16), b.astype(jnp.bfloat16),
                   preferred_element_type=jnp.float32)


def _fast_recip(x):
    # EUP approximate reciprocal (moves the softmax divide off the VALU slot).
    if hasattr(pl, "reciprocal"):
        return pl.reciprocal(x, approx=True)
    return 1.0 / x   # fallback for older JAX


# ============================ fused Pallas kernel ============================

def fused_bert_kernel(emb_ref, mask_ref, feat_ref, g_emb_ref, b_emb_ref,
                      wqkv_ref, bqkv_ref, wo_ref, bo_ref, g1_ref, be1_ref,
                      w1_ref, b1_ref, w2_ref, b2_ref, g2_ref, be2_ref,
                      wp_ref, bp_ref, wf_ref, bf_ref, wfc_ref, bfc_ref,
                      out_ref):
    """Whole forward in one grid-less kernel; the layer loop is statically unrolled."""
    # Feature path is independent of BERT; computing it here lets the scheduler
    # hide it under the encoder (single basic block -> free reordering).
    feat = _bdot(feat_ref[...], wf_ref[...]) + bf_ref[...]          # (B, 32)

    # Embedding LayerNorm; hidden state stays in vregs/values for the whole forward.
    x = _layernorm(emb_ref[...], g_emb_ref[...], b_emb_ref[...])    # (B*S, H) f32
    mask = mask_ref[...]                                            # (B, 1, S) additive
    scale = 1.0 / (HD ** 0.5)

    for l in range(NLAYERS):                                        # static unroll
        # ---- fused QKV projection: one (H, 3H) matmul, one bf16 cast ----
        qkv = _bdot(x, wqkv_ref[l]) + bqkv_ref[l]                   # (B*S, 3H) f32
        qkv_bf = qkv.astype(jnp.bfloat16)

        ctx_heads = []
        for n in range(NH):                                         # static unroll over heads
            qh = qkv_bf[:, n * HD:(n + 1) * HD].reshape(B, S, HD)
            kh = qkv_bf[:, H + n * HD:H + (n + 1) * HD].reshape(B, S, HD)
            vh = qkv_bf[:, 2 * H + n * HD:2 * H + (n + 1) * HD].reshape(B, S, HD)
            s = jnp.einsum('bqd,bkd->bqk', qh, kh,
                           preferred_element_type=jnp.float32) * scale + mask
            s = s - jnp.max(s, axis=-1, keepdims=True)
            p = jnp.exp(s)
            p = p * _fast_recip(jnp.sum(p, axis=-1, keepdims=True))
            ctx_heads.append(jnp.einsum('bqk,bkd->bqd', p.astype(jnp.bfloat16), vh,
                                        preferred_element_type=jnp.float32))
        # heads stay in vregs; lane-concat instead of masked scratch stores
        ctx = jnp.concatenate(ctx_heads, axis=-1).reshape(BS, H)

        attn = _bdot(ctx, wo_ref[l]) + bo_ref[l]
        h1 = _layernorm(x + attn, g1_ref[l], be1_ref[l])

        # ---- feed-forward (intermediate zero-padded to 128 lanes; exact) ----
        ff = _gelu(_bdot(h1, w1_ref[l]) + b1_ref[l])                # (B*S, I_PAD)
        ff = _bdot(ff, w2_ref[l]) + b2_ref[l]                       # (B*S, H)
        x = _layernorm(h1 + ff, g2_ref[l], be2_ref[l])

    # ---- pooler + fused head ----
    cls = x.reshape(B, S, H)[:, 0, :]                               # [CLS] hidden state
    pooled = jnp.tanh(_bdot(cls, wp_ref[...]) + bp_ref[...])        # BERT pooler
    combined = jnp.concatenate([pooled, feat], axis=-1)             # (B, H + 32)
    out_ref[...] = _bdot(combined, wfc_ref[...]) + bfc_ref[...]     # fc -> (B, 1)


# ============================ pallas_call wrapper ============================

_LAYER_KEYS = ('wqkv', 'bqkv', 'wo', 'bo', 'g1', 'be1',
               'w1p', 'b1p', 'w2p', 'b2', 'g2', 'be2')
_HEAD_KEYS = ('wp', 'bp', 'wf', 'bf', 'wfc', 'bfc')


def bert_with_features(params, input_ids, attention_mask, features):
    # embedding gathers are data-dependent; done in plain JAX (glue).
    emb = embed(params, input_ids).reshape(BS, H)
    mask_add = ((1.0 - attention_mask.astype(jnp.float32)) * MASK_NEG)[:, None, :]  # (B,1,S)

    args = ([emb, mask_add, features, params['g_emb'], params['b_emb']]
            + [params[k] for k in _LAYER_KEYS]
            + [params[k] for k in _HEAD_KEYS])

    # Grid-less call: every array is a single whole-array VMEM block (all weights
    # together are tens of KiB); the 2-layer loop is unrolled inside the kernel.
    return pl.pallas_call(
        fused_bert_kernel,
        out_shape=jax.ShapeDtypeStruct((B, 1), jnp.float32),
    )(*args)


# ============================ model glue (plain JAX) ============================

def init_params(key):
    ks = iter(jax.random.split(key, 40))
    bf16 = jnp.bfloat16

    def w(shape, dtype=jnp.float32):
        return (jax.random.normal(next(ks), shape, jnp.float32) * 0.1).astype(dtype)

    # true (unpadded) FFN weights for the reference
    w1 = w((NLAYERS, H, I), bf16)
    b1 = w((NLAYERS, 1, I))
    w2 = w((NLAYERS, I, H), bf16)
    # zero-padded FFN weights for the kernel (numerically exact padding)
    w1p = jnp.zeros((NLAYERS, H, I_PAD), bf16).at[:, :, :I].set(w1)
    b1p = jnp.zeros((NLAYERS, 1, I_PAD), jnp.float32).at[:, :, :I].set(b1)
    w2p = jnp.zeros((NLAYERS, I_PAD, H), bf16).at[:, :I, :].set(w2)

    p = {
        'word_emb': w((VOCAB, H)),
        'pos_emb': w((MAX_POS, H)),
        'type_emb': w((TYPE_VOCAB, H)),
        'g_emb': jnp.ones((1, H), jnp.float32),
        'b_emb': jnp.zeros((1, H), jnp.float32),
        # per-layer weights stacked on a leading NLAYERS axis (statically indexed)
        'wqkv': w((NLAYERS, H, 3 * H), bf16),    # fused [Wq | Wk | Wv]
        'bqkv': w((NLAYERS, 1, 3 * H)),
        'wo': w((NLAYERS, H, H), bf16), 'bo': w((NLAYERS, 1, H)),
        'g1': jnp.ones((NLAYERS, 1, H), jnp.float32), 'be1': jnp.zeros((NLAYERS, 1, H), jnp.float32),
        'w1': w1, 'b1': b1, 'w2': w2,
        'w1p': w1p, 'b1p': b1p, 'w2p': w2p,
        'b2': w((NLAYERS, 1, H)),
        'g2': jnp.ones((NLAYERS, 1, H), jnp.float32), 'be2': jnp.zeros((NLAYERS, 1, H), jnp.float32),
        # BERT pooler
        'wp': w((H, H), bf16), 'bp': w((1, H)),
        # feature_layer: Linear(feature_size, 32)
        'wf': w((F, FEAT_OUT), bf16), 'bf': w((1, FEAT_OUT)),
        # fc: Linear(hidden + 32, 1) — single fused weight against concat([pooled, feat])
        'wfc': w((H + FEAT_OUT, 1), bf16), 'bfc': w((1, 1)),
    }
    return p


def embed(params, input_ids):
    pos_ids = jnp.arange(input_ids.shape[1])
    emb = (params['word_emb'][input_ids]
           + params['pos_emb'][pos_ids][None, :, :]
           + params['type_emb'][jnp.zeros_like(input_ids)])
    return emb.astype(jnp.float32)


# ---------------------- pure-JAX reference (for checking) ----------------------

def reference(params, input_ids, attention_mask, features):
    h = _layernorm(embed(params, input_ids).reshape(BS, H),
                   params['g_emb'], params['b_emb'])
    mask_add = ((1.0 - attention_mask.astype(jnp.float32)) * MASK_NEG)[:, None, :]
    scale = 1.0 / (HD ** 0.5)
    for l in range(NLAYERS):
        wqkv = params['wqkv'][l]
        bqkv = params['bqkv'][l]
        q = _bdot(h, wqkv[:, :H]) + bqkv[:, :H]
        k = _bdot(h, wqkv[:, H:2 * H]) + bqkv[:, H:2 * H]
        v = _bdot(h, wqkv[:, 2 * H:]) + bqkv[:, 2 * H:]
        q3, k3, v3 = (t.reshape(B, S, H) for t in (q, k, v))
        ctxs = []
        for n in range(NH):
            sl = slice(n * HD, (n + 1) * HD)
            s = jnp.einsum('bqd,bkd->bqk',
                           q3[:, :, sl].astype(jnp.bfloat16),
                           k3[:, :, sl].astype(jnp.bfloat16),
                           preferred_element_type=jnp.float32) * scale + mask_add
            s = s - jnp.max(s, axis=-1, keepdims=True)
            p = jnp.exp(s)
            p = p / jnp.sum(p, axis=-1, keepdims=True)
            ctxs.append(jnp.einsum('bqk,bkd->bqd',
                                   p.astype(jnp.bfloat16),
                                   v3[:, :, sl].astype(jnp.bfloat16),
                                   preferred_element_type=jnp.float32))
        ctx = jnp.concatenate(ctxs, axis=-1).reshape(BS, H)
        attn = _bdot(ctx, params['wo'][l]) + params['bo'][l]
        h1 = _layernorm(h + attn, params['g1'][l], params['be1'][l])
        ff = _gelu(_bdot(h1, params['w1'][l]) + params['b1'][l])
        ff = _bdot(ff, params['w2'][l]) + params['b2'][l]
        h = _layernorm(h1 + ff, params['g2'][l], params['be2'][l])
    pooled = jnp.tanh(_bdot(h.reshape(B, S, H)[:, 0, :], params['wp']) + params['bp'])
    feat = _bdot(features, params['wf']) + params['bf']
    combined = jnp.concatenate([pooled, feat], axis=-1)
    return _bdot(combined, params['wfc']) + params['bfc']


if __name__ == "__main__":
    key = jax.random.PRNGKey(0)
    pkey, ikey, fkey = jax.random.split(key, 3)

    params = init_params(pkey)
    input_ids = jax.random.randint(ikey, (B, S), 0, VOCAB, dtype=jnp.int32)
    attention_mask = jnp.ones((B, S), jnp.int32).at[1, S - 2:].set(0)
    features = jax.random.normal(fkey, (B, F), jnp.float32)

    fwd = jax.jit(bert_with_features)
    out = jax.block_until_ready(fwd(params, input_ids, attention_mask, features))

    ref = reference(params, input_ids, attention_mask, features)
    assert out.shape == (B, 1), out.shape
    # tolerance covers approx EUP reciprocal in the kernel's softmax vs exact divide in the reference
    assert jnp.allclose(out, ref, atol=1e-2, rtol=1e-2), (out, ref)
    print("KERNEL_OK")
</pallas_src>

<mosaic_0001>
module attributes {stable_mosaic.version = 11 : i64} {
  func.func @fused_bert_kernel(%arg0: memref<16x32xf32, #tpu.memory_space<vmem>>, %arg1: memref<2x1x8xf32, #tpu.memory_space<vmem>>, %arg2: memref<2x4xf32, #tpu.memory_space<vmem>>, %arg3: memref<1x32xf32, #tpu.memory_space<vmem>>, %arg4: memref<1x32xf32, #tpu.memory_space<vmem>>, %arg5: memref<2x32x96xbf16, #tpu.memory_space<vmem>>, %arg6: memref<2x1x96xf32, #tpu.memory_space<vmem>>, %arg7: memref<2x32x32xbf16, #tpu.memory_space<vmem>>, %arg8: memref<2x1x32xf32, #tpu.memory_space<vmem>>, %arg9: memref<2x1x32xf32, #tpu.memory_space<vmem>>, %arg10: memref<2x1x32xf32, #tpu.memory_space<vmem>>, %arg11: memref<2x32x128xbf16, #tpu.memory_space<vmem>>, %arg12: memref<2x1x128xf32, #tpu.memory_space<vmem>>, %arg13: memref<2x128x32xbf16, #tpu.memory_space<vmem>>, %arg14: memref<2x1x32xf32, #tpu.memory_space<vmem>>, %arg15: memref<2x1x32xf32, #tpu.memory_space<vmem>>, %arg16: memref<2x1x32xf32, #tpu.memory_space<vmem>>, %arg17: memref<32x32xbf16, #tpu.memory_space<vmem>>, %arg18: memref<1x32xf32, #tpu.memory_space<vmem>>, %arg19: memref<4x32xbf16, #tpu.memory_space<vmem>>, %arg20: memref<1x32xf32, #tpu.memory_space<vmem>>, %arg21: memref<64x1xbf16, #tpu.memory_space<vmem>>, %arg22: memref<1x1xf32, #tpu.memory_space<vmem>>, %arg23: memref<2x1xf32, #tpu.memory_space<vmem>>) attributes {dimension_semantics = [], scalar_prefetch = 0 : i64, scratch_operands = 0 : i64, tpu.core_type = #tpu.core_type<tc>} {
    %c0 = arith.constant 0 : index
    %c0_0 = arith.constant 0 : index
    %0 = vector.load %arg2[%c0, %c0_0] : memref<2x4xf32, #tpu.memory_space<vmem>>, vector<2x4xf32>
    %c0_1 = arith.constant 0 : index
    %c0_2 = arith.constant 0 : index
    %1 = vector.load %arg19[%c0_1, %c0_2] : memref<4x32xbf16, #tpu.memory_space<vmem>>, vector<4x32xbf16>
    %2 = arith.truncf %0 : vector<2x4xf32> to vector<2x4xbf16>
    %cst = arith.constant dense<0.000000e+00> : vector<2x32xf32>
    %3 = tpu.matmul %2, %1, %cst {dimension_numbers = #tpu.dot_dimension_numbers<[1], [0], [0], [1], [0, 0, 1, 1], [], []>} : vector<2x4xbf16>, vector<4x32xbf16>, vector<2x32xf32> -> vector<2x32xf32>
    %c0_3 = arith.constant 0 : index
    %c0_4 = arith.constant 0 : index
    %4 = vector.load %arg20[%c0_3, %c0_4] : memref<1x32xf32, #tpu.memory_space<vmem>>, vector<1x32xf32>
    %5 = vector.broadcast %4 : vector<1x32xf32> to vector<2x32xf32>
    %6 = arith.addf %3, %5 : vector<2x32xf32>
    %c0_5 = arith.constant 0 : index
    %c0_6 = arith.constant 0 : index
    %7 = vector.load %arg0[%c0_5, %c0_6] : memref<16x32xf32, #tpu.memory_space<vmem>>, vector<16x32xf32>
    %c0_7 = arith.constant 0 : index
    %c0_8 = arith.constant 0 : index
    %8 = vector.load %arg3[%c0_7, %c0_8] : memref<1x32xf32, #tpu.memory_space<vmem>>, vector<1x32xf32>
    %c0_9 = arith.constant 0 : index
    %c0_10 = arith.constant 0 : index
    %9 = vector.load %arg4[%c0_9, %c0_10] : memref<1x32xf32, #tpu.memory_space<vmem>>, vector<1x32xf32>
    %cst_11 = arith.constant dense<0.000000e+00> : vector<16xf32>
    %10 = vector.multi_reduction <add>, %7, %cst_11 [1] : vector<16x32xf32> to vector<16xf32>
    %11 = vector.shape_cast %10 : vector<16xf32> to vector<16x1xf32>
    %cst_12 = arith.constant 3.200000e+01 : f32
    %12 = vector.broadcast %cst_12 : f32 to vector<16x1xf32>
    %13 = arith.divf %11, %12 : vector<16x1xf32>
    %14 = vector.broadcast %13 : vector<16x1xf32> to vector<16x32xf32>
    %15 = arith.subf %7, %14 : vector<16x32xf32>
    %16 = arith.mulf %15, %15 : vector<16x32xf32>
    %cst_13 = arith.constant dense<0.000000e+00> : vector<16xf32>
    %17 = vector.multi_reduction <add>, %16, %cst_13 [1] : vector<16x32xf32> to vector<16xf32>
    %18 = vector.shape_cast %17 : vector<16xf32> to vector<16x1xf32>
    %cst_14 = arith.constant 3.200000e+01 : f32
    %19 = vector.broadcast %cst_14 : f32 to vector<16x1xf32>
    %20 = arith.divf %18, %19 : vector<16x1xf32>
    %21 = vector.broadcast %13 : vector<16x1xf32> to vector<16x32xf32>
    %22 = arith.subf %7, %21 : vector<16x32xf32>
    %cst_15 = arith.constant 9.99999996E-13 : f32
    %23 = vector.broadcast %cst_15 : f32 to vector<16x1xf32>
    %24 = arith.addf %20, %23 : vector<16x1xf32>
    %25 = math.rsqrt %24 : vector<16x1xf32>
    %26 = vector.broadcast %25 : vector<16x1xf32> to vector<16x32xf32>
    %27 = arith.mulf %22, %26 : vector<16x32xf32>
    %28 = vector.broadcast %8 : vector<1x32xf32> to vector<16x32xf32>
    %29 = arith.mulf %27, %28 : vector<16x32xf32>
    %30 = vector.broadcast %9 : vector<1x32xf32> to vector<16x32xf32>
    %31 = arith.addf %29, %30 : vector<16x32xf32>
    %c0_16 = arith.constant 0 : index
    %c0_17 = arith.constant 0 : index
    %c0_18 = arith.constant 0 : index
    %32 = vector.load %arg1[%c0_16, %c0_17, %c0_18] : memref<2x1x8xf32, #tpu.memory_space<vmem>>, vector<2x1x8xf32>
    %c0_19 = arith.constant 0 : index
    %c0_20 = arith.constant 0 : index
    %c0_21 = arith.constant 0 : index
    %33 = vector.load %arg5[%c0_19, %c0_20, %c0_21] : memref<2x32x96xbf16, #tpu.memory_space<vmem>>, vector<1x32x96xbf16>
    %34 = vector.shape_cast %33 : vector<1x32x96xbf16> to vector<32x96xbf16>
    %35 = arith.truncf %31 : vector<16x32xf32> to vector<16x32xbf16>
    %cst_22 = arith.constant dense<0.000000e+00> : vector<16x96xf32>
    %36 = tpu.matmul %35, %34, %cst_22 {dimension_numbers = #tpu.dot_dimension_numbers<[1], [0], [0], [1], [0, 0, 1, 1], [], []>} : vector<16x32xbf16>, vector<32x96xbf16>, vector<16x96xf32> -> vector<16x96xf32>
    %c0_23 = arith.constant 0 : index
    %c0_24 = arith.constant 0 : index
    %c0_25 = arith.constant 0 : index
    %37 = vector.load %arg6[%c0_23, %c0_24, %c0_25] : memref<2x1x96xf32, #tpu.memory_space<vmem>>, vector<1x1x96xf32>
    %38 = vector.shape_cast %37 : vector<1x1x96xf32> to vector<1x96xf32>
    %39 = vector.broadcast %38 : vector<1x96xf32> to vector<16x96xf32>
    %40 = arith.addf %36, %39 : vector<16x96xf32>
    %41 = arith.truncf %40 : vector<16x96xf32> to vector<16x96xbf16>
    %42 = vector.extract_strided_slice %41 {offsets = [0, 0], sizes = [16, 16], strides = [1, 1]} : vector<16x96xbf16> to vector<16x16xbf16>
    %43 = vector.shape_cast %42 : vector<16x16xbf16> to vector<2x8x16xbf16>
    %44 = vector.extract_strided_slice %41 {offsets = [0, 32], sizes = [16, 16], strides = [1, 1]} : vector<16x96xbf16> to vector<16x16xbf16>
    %45 = vector.shape_cast %44 : vector<16x16xbf16> to vector<2x8x16xbf16>
    %46 = vector.extract_strided_slice %41 {offsets = [0, 64], sizes = [16, 16], strides = [1, 1]} : vector<16x96xbf16> to vector<16x16xbf16>
    %47 = vector.shape_cast %46 : vector<16x16xbf16> to vector<2x8x16xbf16>
    "tpu.trace_start"() <{level = 10 : i32, message = "bqd,bkd->bqk"}> : () -> ()
    %cst_26 = arith.constant dense<0.000000e+00> : vector<2x8x8xf32>
    %48 = tpu.matmul %43, %45, %cst_26 {dimension_numbers = #tpu.dot_dimension_numbers<[2], [2], [1], [1], [0, 0, 0, 1, 1, 1], [0], [0]>} : vector<2x8x16xbf16>, vector<2x8x16xbf16>, vector<2x8x8xf32> -> vector<2x8x8xf32>
    "tpu.trace_stop"() : () -> ()
    %cst_27 = arith.constant 2.500000e-01 : f32
    %49 = vector.broadcast %cst_27 : f32 to vector<2x8x8xf32>
    %50 = arith.mulf %48, %49 : vector<2x8x8xf32>
    %51 = vector.broadcast %32 : vector<2x1x8xf32> to vector<2x8x8xf32>
    %52 = arith.addf %50, %51 : vector<2x8x8xf32>
    %cst_28 = arith.constant dense<0xFF800000> : vector<2x8xf32>
    %53 = vector.multi_reduction <maximumf>, %52, %cst_28 [2] : vector<2x8x8xf32> to vector<2x8xf32>
    %54 = vector.shape_cast %53 : vector<2x8xf32> to vector<2x8x1xf32>
    %55 = vector.broadcast %54 : vector<2x8x1xf32> to vector<2x8x8xf32>
    %56 = arith.subf %52, %55 : vector<2x8x8xf32>
    %57 = math.exp %56 : vector<2x8x8xf32>
    %cst_29 = arith.constant dense<0.000000e+00> : vector<2x8xf32>
    %58 = vector.multi_reduction <add>, %57, %cst_29 [2] : vector<2x8x8xf32> to vector<2x8xf32>
    %59 = vector.shape_cast %58 : vector<2x8xf32> to vector<2x8x1xf32>
    %60 = tpu.reciprocal %59 {approx = true} : vector<2x8x1xf32> -> vector<2x8x1xf32>
    %61 = vector.broadcast %60 : vector<2x8x1xf32> to vector<2x8x8xf32>
    %62 = arith.mulf %57, %61 : vector<2x8x8xf32>
    %63 = arith.truncf %62 : vector<2x8x8xf32> to vector<2x8x8xbf16>
    "tpu.trace_start"() <{level = 10 : i32, message = "bqk,bkd->bqd"}> : () -> ()
    %cst_30 = arith.constant dense<0.000000e+00> : vector<2x8x16xf32>
    %64 = tpu.matmul %63, %47, %cst_30 {dimension_numbers = #tpu.dot_dimension_numbers<[2], [1], [1], [2], [0, 0, 0, 1, 1, 2], [0], [0]>} : vector<2x8x8xbf16>, vector<2x8x16xbf16>, vector<2x8x16xf32> -> vector<2x8x16xf32>
    "tpu.trace_stop"() : () -> ()
    %65 = vector.extract_strided_slice %41 {offsets = [0, 16], sizes = [16, 16], strides = [1, 1]} : vector<16x96xbf16> to vector<16x16xbf16>
    %66 = vector.shape_cast %65 : vector<16x16xbf16> to vector<2x8x16xbf16>
    %67 = vector.extract_strided_slice %41 {offsets = [0, 48], sizes = [16, 16], strides = [1, 1]} : vector<16x96xbf16> to vector<16x16xbf16>
    %68 = vector.shape_cast %67 : vector<16x16xbf16> to vector<2x8x16xbf16>
    %69 = vector.extract_strided_slice %41 {offsets = [0, 80], sizes = [16, 16], strides = [1, 1]} : vector<16x96xbf16> to vector<16x16xbf16>
    %70 = vector.shape_cast %69 : vector<16x16xbf16> to vector<2x8x16xbf16>
    "tpu.trace_start"() <{level = 10 : i32, message = "bqd,bkd->bqk"}> : () -> ()
    %cst_31 = arith.constant dense<0.000000e+00> : vector<2x8x8xf32>
    %71 = tpu.matmul %66, %68, %cst_31 {dimension_numbers = #tpu.dot_dimension_numbers<[2], [2], [1], [1], [0, 0, 0, 1, 1, 1], [0], [0]>} : vector<2x8x16xbf16>, vector<2x8x16xbf16>, vector<2x8x8xf32> -> vector<2x8x8xf32>
    "tpu.trace_stop"() : () -> ()
    %cst_32 = arith.constant 2.500000e-01 : f32
    %72 = vector.broadcast %cst_32 : f32 to vector<2x8x8xf32>
    %73 = arith.mulf %71, %72 : vector<2x8x8xf32>
    %74 = vector.broadcast %32 : vector<2x1x8xf32> to vector<2x8x8xf32>
    %75 = arith.addf %73, %74 : vector<2x8x8xf32>
    %cst_33 = arith.constant dense<0xFF800000> : vector<2x8xf32>
    %76 = vector.multi_reduction <maximumf>, %75, %cst_33 [2] : vector<2x8x8xf32> to vector<2x8xf32>
    %77 = vector.shape_cast %76 : vector<2x8xf32> to vector<2x8x1xf32>
    %78 = vector.broadcast %77 : vector<2x8x1xf32> to vector<2x8x8xf32>
    %79 = arith.subf %75, %78 : vector<2x8x8xf32>
    %80 = math.exp %79 : vector<2x8x8xf32>
    %cst_34 = arith.constant dense<0.000000e+00> : vector<2x8xf32>
    %81 = vector.multi_reduction <add>, %80, %cst_34 [2] : vector<2x8x8xf32> to vector<2x8xf32>
    %82 = vector.shape_cast %81 : vector<2x8xf32> to vector<2x8x1xf32>
    %83 = tpu.reciprocal %82 {approx = true} : vector<2x8x1xf32> -> vector<2x8x1xf32>
    %84 = vector.broadcast %83 : vector<2x8x1xf32> to vector<2x8x8xf32>
    %85 = arith.mulf %80, %84 : vector<2x8x8xf32>
    %86 = arith.truncf %85 : vector<2x8x8xf32> to vector<2x8x8xbf16>
    "tpu.trace_start"() <{level = 10 : i32, message = "bqk,bkd->bqd"}> : () -> ()
    %cst_35 = arith.constant dense<0.000000e+00> : vector<2x8x16xf32>
    %87 = tpu.matmul %86, %70, %cst_35 {dimension_numbers = #tpu.dot_dimension_numbers<[2], [1], [1], [2], [0, 0, 0, 1, 1, 2], [0], [0]>} : vector<2x8x8xbf16>, vector<2x8x16xbf16>, vector<2x8x16xf32> -> vector<2x8x16xf32>
    "tpu.trace_stop"() : () -> ()
    %88 = tpu.concatenate %64, %87 in 2 : vector<2x8x16xf32>, vector<2x8x16xf32> -> vector<2x8x32xf32>
    %89 = vector.shape_cast %88 : vector<2x8x32xf32> to vector<16x32xf32>
    %c0_36 = arith.constant 0 : index
    %c0_37 = arith.constant 0 : index
    %c0_38 = arith.constant 0 : index
    %90 = vector.load %arg7[%c0_36, %c0_37, %c0_38] : memref<2x32x32xbf16, #tpu.memory_space<vmem>>, vector<1x32x32xbf16>
    %91 = vector.shape_cast %90 : vector<1x32x32xbf16> to vector<32x32xbf16>
    %92 = arith.truncf %89 : vector<16x32xf32> to vector<16x32xbf16>
    %cst_39 = arith.constant dense<0.000000e+00> : vector<16x32xf32>
    %93 = tpu.matmul %92, %91, %cst_39 {dimension_numbers = #tpu.dot_dimension_numbers<[1], [0], [0], [1], [0, 0, 1, 1], [], []>} : vector<16x32xbf16>, vector<32x32xbf16>, vector<16x32xf32> -> vector<16x32xf32>
    %c0_40 = arith.constant 0 : index
    %c0_41 = arith.constant 0 : index
    %c0_42 = arith.constant 0 : index
    %94 = vector.load %arg8[%c0_40, %c0_41, %c0_42] : memref<2x1x32xf32, #tpu.memory_space<vmem>>, vector<1x1x32xf32>
    %95 = vector.shape_cast %94 : vector<1x1x32xf32> to vector<1x32xf32>
    %96 = vector.broadcast %95 : vector<1x32xf32> to vector<16x32xf32>
    %97 = arith.addf %93, %96 : vector<16x32xf32>
    %98 = arith.addf %31, %97 : vector<16x32xf32>
    %c0_43 = arith.constant 0 : index
    %c0_44 = arith.constant 0 : index
    %c0_45 = arith.constant 0 : index
    %99 = vector.load %arg9[%c0_43, %c0_44, %c0_45] : memref<2x1x32xf32, #tpu.memory_space<vmem>>, vector<1x1x32xf32>
    %100 = vector.shape_cast %99 : vector<1x1x32xf32> to vector<1x32xf32>
    %c0_46 = arith.constant 0 : index
    %c0_47 = arith.constant 0 : index
    %c0_48 = arith.constant 0 : index
    %101 = vector.load %arg10[%c0_46, %c0_47, %c0_48] : memref<2x1x32xf32, #tpu.memory_space<vmem>>, vector<1x1x32xf32>
    %102 = vector.shape_cast %101 : vector<1x1x32xf32> to vector<1x32xf32>
    %cst_49 = arith.constant dense<0.000000e+00> : vector<16xf32>
    %103 = vector.multi_reduction <add>, %98, %cst_49 [1] : vector<16x32xf32> to vector<16xf32>
    %104 = vector.shape_cast %103 : vector<16xf32> to vector<16x1xf32>
    %cst_50 = arith.constant 3.200000e+01 : f32
    %105 = vector.broadcast %cst_50 : f32 to vector<16x1xf32>
    %106 = arith.divf %104, %105 : vector<16x1xf32>
    %107 = vector.broadcast %106 : vector<16x1xf32> to vector<16x32xf32>
    %108 = arith.subf %98, %107 : vector<16x32xf32>
    %109 = arith.mulf %108, %108 : vector<16x32xf32>
    %cst_51 = arith.constant dense<0.000000e+00> : vector<16xf32>
    %110 = vector.multi_reduction <add>, %109, %cst_51 [1] : vector<16x32xf32> to vector<16xf32>
    %111 = vector.shape_cast %110 : vector<16xf32> to vector<16x1xf32>
    %cst_52 = arith.constant 3.200000e+01 : f32
    %112 = vector.broadcast %cst_52 : f32 to vector<16x1xf32>
    %113 = arith.divf %111, %112 : vector<16x1xf32>
    %114 = vector.broadcast %106 : vector<16x1xf32> to vector<16x32xf32>
    %115 = arith.subf %98, %114 : vector<16x32xf32>
    %cst_53 = arith.constant 9.99999996E-13 : f32
    %116 = vector.broadcast %cst_53 : f32 to vector<16x1xf32>
    %117 = arith.addf %113, %116 : vector<16x1xf32>
    %118 = math.rsqrt %117 : vector<16x1xf32>
    %119 = vector.broadcast %118 : vector<16x1xf32> to vector<16x32xf32>
    %120 = arith.mulf %115, %119 : vector<16x32xf32>
    %121 = vector.broadcast %100 : vector<1x32xf32> to vector<16x32xf32>
    %122 = arith.mulf %120, %121 : vector<16x32xf32>
    %123 = vector.broadcast %102 : vector<1x32xf32> to vector<16x32xf32>
    %124 = arith.addf %122, %123 : vector<16x32xf32>
    %c0_54 = arith.constant 0 : index
    %c0_55 = arith.constant 0 : index
    %c0_56 = arith.constant 0 : index
    %125 = vector.load %arg11[%c0_54, %c0_55, %c0_56] : memref<2x32x128xbf16, #tpu.memory_space<vmem>>, vector<1x32x128xbf16>
    %126 = vector.shape_cast %125 : vector<1x32x128xbf16> to vector<32x128xbf16>
    %127 = arith.truncf %124 : vector<16x32xf32> to vector<16x32xbf16>
    %cst_57 = arith.constant dense<0.000000e+00> : vector<16x128xf32>
    %128 = tpu.matmul %127, %126, %cst_57 {dimension_numbers = #tpu.dot_dimension_numbers<[1], [0], [0], [1], [0, 0, 1, 1], [], []>} : vector<16x32xbf16>, vector<32x128xbf16>, vector<16x128xf32> -> vector<16x128xf32>
    %c0_58 = arith.constant 0 : index
    %c0_59 = arith.constant 0 : index
    %c0_60 = arith.constant 0 : index
    %129 = vector.load %arg12[%c0_58, %c0_59, %c0_60] : memref<2x1x128xf32, #tpu.memory_space<vmem>>, vector<1x1x128xf32>
    %130 = vector.shape_cast %129 : vector<1x1x128xf32> to vector<1x128xf32>
    %131 = vector.broadcast %130 : vector<1x128xf32> to vector<16x128xf32>
    %132 = arith.addf %128, %131 : vector<16x128xf32>
    %133 = arith.mulf %132, %132 : vector<16x128xf32>
    %134 = arith.mulf %132, %133 : vector<16x128xf32>
    %cst_61 = arith.constant 4.471500e-02 : f32
    %135 = vector.broadcast %cst_61 : f32 to vector<16x128xf32>
    %136 = arith.mulf %135, %134 : vector<16x128xf32>
    %137 = arith.addf %132, %136 : vector<16x128xf32>
    %cst_62 = arith.constant 0.797884583 : f32
    %138 = vector.broadcast %cst_62 : f32 to vector<16x128xf32>
    %139 = arith.mulf %138, %137 : vector<16x128xf32>
    %140 = math.tanh %139 : vector<16x128xf32>
    %cst_63 = arith.constant 1.000000e+00 : f32
    %141 = vector.broadcast %cst_63 : f32 to vector<16x128xf32>
    %142 = arith.addf %141, %140 : vector<16x128xf32>
    %cst_64 = arith.constant 5.000000e-01 : f32
    %143 = vector.broadcast %cst_64 : f32 to vector<16x128xf32>
    %144 = arith.mulf %143, %142 : vector<16x128xf32>
    %145 = arith.mulf %132, %144 : vector<16x128xf32>
    %c0_65 = arith.constant 0 : index
    %c0_66 = arith.constant 0 : index
    %c0_67 = arith.constant 0 : index
    %146 = vector.load %arg13[%c0_65, %c0_66, %c0_67] : memref<2x128x32xbf16, #tpu.memory_space<vmem>>, vector<1x128x32xbf16>
    %147 = vector.shape_cast %146 : vector<1x128x32xbf16> to vector<128x32xbf16>
    %148 = arith.truncf %145 : vector<16x128xf32> to vector<16x128xbf16>
    %cst_68 = arith.constant dense<0.000000e+00> : vector<16x32xf32>
    %149 = tpu.matmul %148, %147, %cst_68 {dimension_numbers = #tpu.dot_dimension_numbers<[1], [0], [0], [1], [0, 0, 1, 1], [], []>} : vector<16x128xbf16>, vector<128x32xbf16>, vector<16x32xf32> -> vector<16x32xf32>
    %c0_69 = arith.constant 0 : index
    %c0_70 = arith.constant 0 : index
    %c0_71 = arith.constant 0 : index
    %150 = vector.load %arg14[%c0_69, %c0_70, %c0_71] : memref<2x1x32xf32, #tpu.memory_space<vmem>>, vector<1x1x32xf32>
    %151 = vector.shape_cast %150 : vector<1x1x32xf32> to vector<1x32xf32>
    %152 = vector.broadcast %151 : vector<1x32xf32> to vector<16x32xf32>
    %153 = arith.addf %149, %152 : vector<16x32xf32>
    %154 = arith.addf %124, %153 : vector<16x32xf32>
    %c0_72 = arith.constant 0 : index
    %c0_73 = arith.constant 0 : index
    %c0_74 = arith.constant 0 : index
    %155 = vector.load %arg15[%c0_72, %c0_73, %c0_74] : memref<2x1x32xf32, #tpu.memory_space<vmem>>, vector<1x1x32xf32>
    %156 = vector.shape_cast %155 : vector<1x1x32xf32> to vector<1x32xf32>
    %c0_75 = arith.constant 0 : index
    %c0_76 = arith.constant 0 : index
    %c0_77 = arith.constant 0 : index
    %157 = vector.load %arg16[%c0_75, %c0_76, %c0_77] : memref<2x1x32xf32, #tpu.memory_space<vmem>>, vector<1x1x32xf32>
    %158 = vector.shape_cast %157 : vector<1x1x32xf32> to vector<1x32xf32>
    %cst_78 = arith.constant dense<0.000000e+00> : vector<16xf32>
    %159 = vector.multi_reduction <add>, %154, %cst_78 [1] : vector<16x32xf32> to vector<16xf32>
    %160 = vector.shape_cast %159 : vector<16xf32> to vector<16x1xf32>
    %cst_79 = arith.constant 3.200000e+01 : f32
    %161 = vector.broadcast %cst_79 : f32 to vector<16x1xf32>
    %162 = arith.divf %160, %161 : vector<16x1xf32>
    %163 = vector.broadcast %162 : vector<16x1xf32> to vector<16x32xf32>
    %164 = arith.subf %154, %163 : vector<16x32xf32>
    %165 = arith.mulf %164, %164 : vector<16x32xf32>
    %cst_80 = arith.constant dense<0.000000e+00> : vector<16xf32>
    %166 = vector.multi_reduction <add>, %165, %cst_80 [1] : vector<16x32xf32> to vector<16xf32>
    %167 = vector.shape_cast %166 : vector<16xf32> to vector<16x1xf32>
    %cst_81 = arith.constant 3.200000e+01 : f32
    %168 = vector.broadcast %cst_81 : f32 to vector<16x1xf32>
    %169 = arith.divf %167, %168 : vector<16x1xf32>
    %170 = vector.broadcast %162 : vector<16x1xf32> to vector<16x32xf32>
    %171 = arith.subf %154, %170 : vector<16x32xf32>
    %cst_82 = arith.constant 9.99999996E-13 : f32
    %172 = vector.broadcast %cst_82 : f32 to vector<16x1xf32>
    %173 = arith.addf %169, %172 : vector<16x1xf32>
    %174 = math.rsqrt %173 : vector<16x1xf32>
    %175 = vector.broadcast %174 : vector<16x1xf32> to vector<16x32xf32>
    %176 = arith.mulf %171, %175 : vector<16x32xf32>
    %177 = vector.broadcast %156 : vector<1x32xf32> to vector<16x32xf32>
    %178 = arith.mulf %176, %177 : vector<16x32xf32>
    %179 = vector.broadcast %158 : vector<1x32xf32> to vector<16x32xf32>
    %180 = arith.addf %178, %179 : vector<16x32xf32>
    %c1 = arith.constant 1 : index
    %c0_83 = arith.constant 0 : index
    %c0_84 = arith.constant 0 : index
    %181 = vector.load %arg5[%c1, %c0_83, %c0_84] : memref<2x32x96xbf16, #tpu.memory_space<vmem>>, vector<1x32x96xbf16>
    %182 = vector.shape_cast %181 : vector<1x32x96xbf16> to vector<32x96xbf16>
    %183 = arith.truncf %180 : vector<16x32xf32> to vector<16x32xbf16>
    %cst_85 = arith.constant dense<0.000000e+00> : vector<16x96xf32>
    %184 = tpu.matmul %183, %182, %cst_85 {dimension_numbers = #tpu.dot_dimension_numbers<[1], [0], [0], [1], [0, 0, 1, 1], [], []>} : vector<16x32xbf16>, vector<32x96xbf16>, vector<16x96xf32> -> vector<16x96xf32>
    %c1_86 = arith.constant 1 : index
    %c0_87 = arith.constant 0 : index
    %c0_88 = arith.constant 0 : index
    %185 = vector.load %arg6[%c1_86, %c0_87, %c0_88] : memref<2x1x96xf32, #tpu.memory_space<vmem>>, vector<1x1x96xf32>
    %186 = vector.shape_cast %185 : vector<1x1x96xf32> to vector<1x96xf32>
    %187 = vector.broadcast %186 : vector<1x96xf32> to vector<16x96xf32>
    %188 = arith.addf %184, %187 : vector<16x96xf32>
    %189 = arith.truncf %188 : vector<16x96xf32> to vector<16x96xbf16>
    %190 = vector.extract_strided_slice %189 {offsets = [0, 0], sizes = [16, 16], strides = [1, 1]} : vector<16x96xbf16> to vector<16x16xbf16>
    %191 = vector.shape_cast %190 : vector<16x16xbf16> to vector<2x8x16xbf16>
    %192 = vector.extract_strided_slice %189 {offsets = [0, 32], sizes = [16, 16], strides = [1, 1]} : vector<16x96xbf16> to vector<16x16xbf16>
    %193 = vector.shape_cast %192 : vector<16x16xbf16> to vector<2x8x16xbf16>
    %194 = vector.extract_strided_slice %189 {offsets = [0, 64], sizes = [16, 16], strides = [1, 1]} : vector<16x96xbf16> to vector<16x16xbf16>
    %195 = vector.shape_cast %194 : vector<16x16xbf16> to vector<2x8x16xbf16>
    "tpu.trace_start"() <{level = 10 : i32, message = "bqd,bkd->bqk"}> : () -> ()
    %cst_89 = arith.constant dense<0.000000e+00> : vector<2x8x8xf32>
    %196 = tpu.matmul %191, %193, %cst_89 {dimension_numbers = #tpu.dot_dimension_numbers<[2], [2], [1], [1], [0, 0, 0, 1, 1, 1], [0], [0]>} : vector<2x8x16xbf16>, vector<2x8x16xbf16>, vector<2x8x8xf32> -> vector<2x8x8xf32>
    "tpu.trace_stop"() : () -> ()
    %cst_90 = arith.constant 2.500000e-01 : f32
    %197 = vector.broadcast %cst_90 : f32 to vector<2x8x8xf32>
    %198 = arith.mulf %196, %197 : vector<2x8x8xf32>
    %199 = vector.broadcast %32 : vector<2x1x8xf32> to vector<2x8x8xf32>
    %200 = arith.addf %198, %199 : vector<2x8x8xf32>
    %cst_91 = arith.constant dense<0xFF800000> : vector<2x8xf32>
    %201 = vector.multi_reduction <maximumf>, %200, %cst_91 [2] : vector<2x8x8xf32> to vector<2x8xf32>
    %202 = vector.shape_cast %201 : vector<2x8xf32> to vector<2x8x1xf32>
    %203 = vector.broadcast %202 : vector<2x8x1xf32> to vector<2x8x8xf32>
    %204 = arith.subf %200, %203 : vector<2x8x8xf32>
    %205 = math.exp %204 : vector<2x8x8xf32>
    %cst_92 = arith.constant dense<0.000000e+00> : vector<2x8xf32>
    %206 = vector.multi_reduction <add>, %205, %cst_92 [2] : vector<2x8x8xf32> to vector<2x8xf32>
    %207 = vector.shape_cast %206 : vector<2x8xf32> to vector<2x8x1xf32>
    %208 = tpu.reciprocal %207 {approx = true} : vector<2x8x1xf32> -> vector<2x8x1xf32>
    %209 = vector.broadcast %208 : vector<2x8x1xf32> to vector<2x8x8xf32>
    %210 = arith.mulf %205, %209 : vector<2x8x8xf32>
    %211 = arith.truncf %210 : vector<2x8x8xf32> to vector<2x8x8xbf16>
    "tpu.trace_start"() <{level = 10 : i32, message = "bqk,bkd->bqd"}> : () -> ()
    %cst_93 = arith.constant dense<0.000000e+00> : vector<2x8x16xf32>
    %212 = tpu.matmul %211, %195, %cst_93 {dimension_numbers = #tpu.dot_dimension_numbers<[2], [1], [1], [2], [0, 0, 0, 1, 1, 2], [0], [0]>} : vector<2x8x8xbf16>, vector<2x8x16xbf16>, vector<2x8x16xf32> -> vector<2x8x16xf32>
    "tpu.trace_stop"() : () -> ()
    %213 = vector.extract_strided_slice %189 {offsets = [0, 16], sizes = [16, 16], strides = [1, 1]} : vector<16x96xbf16> to vector<16x16xbf16>
    %214 = vector.shape_cast %213 : vector<16x16xbf16> to vector<2x8x16xbf16>
    %215 = vector.extract_strided_slice %189 {offsets = [0, 48], sizes = [16, 16], strides = [1, 1]} : vector<16x96xbf16> to vector<16x16xbf16>
    %216 = vector.shape_cast %215 : vector<16x16xbf16> to vector<2x8x16xbf16>
    %217 = vector.extract_strided_slice %189 {offsets = [0, 80], sizes = [16, 16], strides = [1, 1]} : vector<16x96xbf16> to vector<16x16xbf16>
    %218 = vector.shape_cast %217 : vector<16x16xbf16> to vector<2x8x16xbf16>
    "tpu.trace_start"() <{level = 10 : i32, message = "bqd,bkd->bqk"}> : () -> ()
    %cst_94 = arith.constant dense<0.000000e+00> : vector<2x8x8xf32>
    %219 = tpu.matmul %214, %216, %cst_94 {dimension_numbers = #tpu.dot_dimension_numbers<[2], [2], [1], [1], [0, 0, 0, 1, 1, 1], [0], [0]>} : vector<2x8x16xbf16>, vector<2x8x16xbf16>, vector<2x8x8xf32> -> vector<2x8x8xf32>
    "tpu.trace_stop"() : () -> ()
    %cst_95 = arith.constant 2.500000e-01 : f32
    %220 = vector.broadcast %cst_95 : f32 to vector<2x8x8xf32>
    %221 = arith.mulf %219, %220 : vector<2x8x8xf32>
    %222 = vector.broadcast %32 : vector<2x1x8xf32> to vector<2x8x8xf32>
    %223 = arith.addf %221, %222 : vector<2x8x8xf32>
    %cst_96 = arith.constant dense<0xFF800000> : vector<2x8xf32>
    %224 = vector.multi_reduction <maximumf>, %223, %cst_96 [2] : vector<2x8x8xf32> to vector<2x8xf32>
    %225 = vector.shape_cast %224 : vector<2x8xf32> to vector<2x8x1xf32>
    %226 = vector.broadcast %225 : vector<2x8x1xf32> to vector<2x8x8xf32>
    %227 = arith.subf %223, %226 : vector<2x8x8xf32>
    %228 = math.exp %227 : vector<2x8x8xf32>
    %cst_97 = arith.constant dense<0.000000e+00> : vector<2x8xf32>
    %229 = vector.multi_reduction <add>, %228, %cst_97 [2] : vector<2x8x8xf32> to vector<2x8xf32>
    %230 = vector.shape_cast %229 : vector<2x8xf32> to vector<2x8x1xf32>
    %231 = tpu.reciprocal %230 {approx = true} : vector<2x8x1xf32> -> vector<2x8x1xf32>
    %232 = vector.broadcast %231 : vector<2x8x1xf32> to vector<2x8x8xf32>
    %233 = arith.mulf %228, %232 : vector<2x8x8xf32>
    %234 = arith.truncf %233 : vector<2x8x8xf32> to vector<2x8x8xbf16>
    "tpu.trace_start"() <{level = 10 : i32, message = "bqk,bkd->bqd"}> : () -> ()
    %cst_98 = arith.constant dense<0.000000e+00> : vector<2x8x16xf32>
    %235 = tpu.matmul %234, %218, %cst_98 {dimension_numbers = #tpu.dot_dimension_numbers<[2], [1], [1], [2], [0, 0, 0, 1, 1, 2], [0], [0]>} : vector<2x8x8xbf16>, vector<2x8x16xbf16>, vector<2x8x16xf32> -> vector<2x8x16xf32>
    "tpu.trace_stop"() : () -> ()
    %236 = tpu.concatenate %212, %235 in 2 : vector<2x8x16xf32>, vector<2x8x16xf32> -> vector<2x8x32xf32>
    %237 = vector.shape_cast %236 : vector<2x8x32xf32> to vector<16x32xf32>
    %c1_99 = arith.constant 1 : index
    %c0_100 = arith.constant 0 : index
    %c0_101 = arith.constant 0 : index
    %238 = vector.load %arg7[%c1_99, %c0_100, %c0_101] : memref<2x32x32xbf16, #tpu.memory_space<vmem>>, vector<1x32x32xbf16>
    %239 = vector.shape_cast %238 : vector<1x32x32xbf16> to vector<32x32xbf16>
    %240 = arith.truncf %237 : vector<16x32xf32> to vector<16x32xbf16>
    %cst_102 = arith.constant dense<0.000000e+00> : vector<16x32xf32>
    %241 = tpu.matmul %240, %239, %cst_102 {dimension_numbers = #tpu.dot_dimension_numbers<[1], [0], [0], [1], [0, 0, 1, 1], [], []>} : vector<16x32xbf16>, vector<32x32xbf16>, vector<16x32xf32> -> vector<16x32xf32>
    %c1_103 = arith.constant 1 : index
    %c0_104 = arith.constant 0 : index
    %c0_105 = arith.constant 0 : index
    %242 = vector.load %arg8[%c1_103, %c0_104, %c0_105] : memref<2x1x32xf32, #tpu.memory_space<vmem>>, vector<1x1x32xf32>
    %243 = vector.shape_cast %242 : vector<1x1x32xf32> to vector<1x32xf32>
    %244 = vector.broadcast %243 : vector<1x32xf32> to vector<16x32xf32>
    %245 = arith.addf %241, %244 : vector<16x32xf32>
    %246 = arith.addf %180, %245 : vector<16x32xf32>
    %c1_106 = arith.constant 1 : index
    %c0_107 = arith.constant 0 : index
    %c0_108 = arith.constant 0 : index
    %247 = vector.load %arg9[%c1_106, %c0_107, %c0_108] : memref<2x1x32xf32, #tpu.memory_space<vmem>>, vector<1x1x32xf32>
    %248 = vector.shape_cast %247 : vector<1x1x32xf32> to vector<1x32xf32>
    %c1_109 = arith.constant 1 : index
    %c0_110 = arith.constant 0 : index
    %c0_111 = arith.constant 0 : index
    %249 = vector.load %arg10[%c1_109, %c0_110, %c0_111] : memref<2x1x32xf32, #tpu.memory_space<vmem>>, vector<1x1x32xf32>
    %250 = vector.shape_cast %249 : vector<1x1x32xf32> to vector<1x32xf32>
    %cst_112 = arith.constant dense<0.000000e+00> : vector<16xf32>
    %251 = vector.multi_reduction <add>, %246, %cst_112 [1] : vector<16x32xf32> to vector<16xf32>
    %252 = vector.shape_cast %251 : vector<16xf32> to vector<16x1xf32>
    %cst_113 = arith.constant 3.200000e+01 : f32
    %253 = vector.broadcast %cst_113 : f32 to vector<16x1xf32>
    %254 = arith.divf %252, %253 : vector<16x1xf32>
    %255 = vector.broadcast %254 : vector<16x1xf32> to vector<16x32xf32>
    %256 = arith.subf %246, %255 : vector<16x32xf32>
    %257 = arith.mulf %256, %256 : vector<16x32xf32>
    %cst_114 = arith.constant dense<0.000000e+00> : vector<16xf32>
    %258 = vector.multi_reduction <add>, %257, %cst_114 [1] : vector<16x32xf32> to vector<16xf32>
    %259 = vector.shape_cast %258 : vector<16xf32> to vector<16x1xf32>
    %cst_115 = arith.constant 3.200000e+01 : f32
    %260 = vector.broadcast %cst_115 : f32 to vector<16x1xf32>
    %261 = arith.divf %259, %260 : vector<16x1xf32>
    %262 = vector.broadcast %254 : vector<16x1xf32> to vector<16x32xf32>
    %263 = arith.subf %246, %262 : vector<16x32xf32>
    %cst_116 = arith.constant 9.99999996E-13 : f32
    %264 = vector.broadcast %cst_116 : f32 to vector<16x1xf32>
    %265 = arith.addf %261, %264 : vector<16x1xf32>
    %266 = math.rsqrt %265 : vector<16x1xf32>
    %267 = vector.broadcast %266 : vector<16x1xf32> to vector<16x32xf32>
    %268 = arith.mulf %263, %267 : vector<16x32xf32>
    %269 = vector.broadcast %248 : vector<1x32xf32> to vector<16x32xf32>
    %270 = arith.mulf %268, %269 : vector<16x32xf32>
    %271 = vector.broadcast %250 : vector<1x32xf32> to vector<16x32xf32>
    %272 = arith.addf %270, %271 : vector<16x32xf32>
    %c1_117 = arith.constant 1 : index
    %c0_118 = arith.constant 0 : index
    %c0_119 = arith.constant 0 : index
    %273 = vector.load %arg11[%c1_117, %c0_118, %c0_119] : memref<2x32x128xbf16, #tpu.memory_space<vmem>>, vector<1x32x128xbf16>
    %274 = vector.shape_cast %273 : vector<1x32x128xbf16> to vector<32x128xbf16>
    %275 = arith.truncf %272 : vector<16x32xf32> to vector<16x32xbf16>
    %cst_120 = arith.constant dense<0.000000e+00> : vector<16x128xf32>
    %276 = tpu.matmul %275, %274, %cst_120 {dimension_numbers = #tpu.dot_dimension_numbers<[1], [0], [0], [1], [0, 0, 1, 1], [], []>} : vector<16x32xbf16>, vector<32x128xbf16>, vector<16x128xf32> -> vector<16x128xf32>
    %c1_121 = arith.constant 1 : index
    %c0_122 = arith.constant 0 : index
    %c0_123 = arith.constant 0 : index
    %277 = vector.load %arg12[%c1_121, %c0_122, %c0_123] : memref<2x1x128xf32, #tpu.memory_space<vmem>>, vector<1x1x128xf32>
    %278 = vector.shape_cast %277 : vector<1x1x128xf32> to vector<1x128xf32>
    %279 = vector.broadcast %278 : vector<1x128xf32> to vector<16x128xf32>
    %280 = arith.addf %276, %279 : vector<16x128xf32>
    %281 = arith.mulf %280, %280 : vector<16x128xf32>
    %282 = arith.mulf %280, %281 : vector<16x128xf32>
    %cst_124 = arith.constant 4.471500e-02 : f32
    %283 = vector.broadcast %cst_124 : f32 to vector<16x128xf32>
    %284 = arith.mulf %283, %282 : vector<16x128xf32>
    %285 = arith.addf %280, %284 : vector<16x128xf32>
    %cst_125 = arith.constant 0.797884583 : f32
    %286 = vector.broadcast %cst_125 : f32 to vector<16x128xf32>
    %287 = arith.mulf %286, %285 : vector<16x128xf32>
    %288 = math.tanh %287 : vector<16x128xf32>
    %cst_126 = arith.constant 1.000000e+00 : f32
    %289 = vector.broadcast %cst_126 : f32 to vector<16x128xf32>
    %290 = arith.addf %289, %288 : vector<16x128xf32>
    %cst_127 = arith.constant 5.000000e-01 : f32
    %291 = vector.broadcast %cst_127 : f32 to vector<16x128xf32>
    %292 = arith.mulf %291, %290 : vector<16x128xf32>
    %293 = arith.mulf %280, %292 : vector<16x128xf32>
    %c1_128 = arith.constant 1 : index
    %c0_129 = arith.constant 0 : index
    %c0_130 = arith.constant 0 : index
    %294 = vector.load %arg13[%c1_128, %c0_129, %c0_130] : memref<2x128x32xbf16, #tpu.memory_space<vmem>>, vector<1x128x32xbf16>
    %295 = vector.shape_cast %294 : vector<1x128x32xbf16> to vector<128x32xbf16>
    %296 = arith.truncf %293 : vector<16x128xf32> to vector<16x128xbf16>
    %cst_131 = arith.constant dense<0.000000e+00> : vector<16x32xf32>
    %297 = tpu.matmul %296, %295, %cst_131 {dimension_numbers = #tpu.dot_dimension_numbers<[1], [0], [0], [1], [0, 0, 1, 1], [], []>} : vector<16x128xbf16>, vector<128x32xbf16>, vector<16x32xf32> -> vector<16x32xf32>
    %c1_132 = arith.constant 1 : index
    %c0_133 = arith.constant 0 : index
    %c0_134 = arith.constant 0 : index
    %298 = vector.load %arg14[%c1_132, %c0_133, %c0_134] : memref<2x1x32xf32, #tpu.memory_space<vmem>>, vector<1x1x32xf32>
    %299 = vector.shape_cast %298 : vector<1x1x32xf32> to vector<1x32xf32>
    %300 = vector.broadcast %299 : vector<1x32xf32> to vector<16x32xf32>
    %301 = arith.addf %297, %300 : vector<16x32xf32>
    %302 = arith.addf %272, %301 : vector<16x32xf32>
    %c1_135 = arith.constant 1 : index
    %c0_136 = arith.constant 0 : index
    %c0_137 = arith.constant 0 : index
    %303 = vector.load %arg15[%c1_135, %c0_136, %c0_137] : memref<2x1x32xf32, #tpu.memory_space<vmem>>, vector<1x1x32xf32>
    %304 = vector.shape_cast %303 : vector<1x1x32xf32> to vector<1x32xf32>
    %c1_138 = arith.constant 1 : index
    %c0_139 = arith.constant 0 : index
    %c0_140 = arith.constant 0 : index
    %305 = vector.load %arg16[%c1_138, %c0_139, %c0_140] : memref<2x1x32xf32, #tpu.memory_space<vmem>>, vector<1x1x32xf32>
    %306 = vector.shape_cast %305 : vector<1x1x32xf32> to vector<1x32xf32>
    %cst_141 = arith.constant dense<0.000000e+00> : vector<16xf32>
    %307 = vector.multi_reduction <add>, %302, %cst_141 [1] : vector<16x32xf32> to vector<16xf32>
    %308 = vector.shape_cast %307 : vector<16xf32> to vector<16x1xf32>
    %cst_142 = arith.constant 3.200000e+01 : f32
    %309 = vector.broadcast %cst_142 : f32 to vector<16x1xf32>
    %310 = arith.divf %308, %309 : vector<16x1xf32>
    %311 = vector.broadcast %310 : vector<16x1xf32> to vector<16x32xf32>
    %312 = arith.subf %302, %311 : vector<16x32xf32>
    %313 = arith.mulf %312, %312 : vector<16x32xf32>
    %cst_143 = arith.constant dense<0.000000e+00> : vector<16xf32>
    %314 = vector.multi_reduction <add>, %313, %cst_143 [1] : vector<16x32xf32> to vector<16xf32>
    %315 = vector.shape_cast %314 : vector<16xf32> to vector<16x1xf32>
    %cst_144 = arith.constant 3.200000e+01 : f32
    %316 = vector.broadcast %cst_144 : f32 to vector<16x1xf32>
    %317 = arith.divf %315, %316 : vector<16x1xf32>
    %318 = vector.broadcast %310 : vector<16x1xf32> to vector<16x32xf32>
    %319 = arith.subf %302, %318 : vector<16x32xf32>
    %cst_145 = arith.constant 9.99999996E-13 : f32
    %320 = vector.broadcast %cst_145 : f32 to vector<16x1xf32>
    %321 = arith.addf %317, %320 : vector<16x1xf32>
    %322 = math.rsqrt %321 : vector<16x1xf32>
    %323 = vector.broadcast %322 : vector<16x1xf32> to vector<16x32xf32>
    %324 = arith.mulf %319, %323 : vector<16x32xf32>
    %325 = vector.broadcast %304 : vector<1x32xf32> to vector<16x32xf32>
    %326 = arith.mulf %324, %325 : vector<16x32xf32>
    %327 = vector.broadcast %306 : vector<1x32xf32> to vector<16x32xf32>
    %328 = arith.addf %326, %327 : vector<16x32xf32>
    %329 = vector.shape_cast %328 : vector<16x32xf32> to vector<2x8x32xf32>
    %330 = vector.extract_strided_slice %329 {offsets = [0, 0, 0], sizes = [2, 1, 32], strides = [1, 1, 1]} : vector<2x8x32xf32> to vector<2x1x32xf32>
    %331 = vector.shape_cast %330 : vector<2x1x32xf32> to vector<2x32xf32>
    %c0_146 = arith.constant 0 : index
    %c0_147 = arith.constant 0 : index
    %332 = vector.load %arg17[%c0_146, %c0_147] : memref<32x32xbf16, #tpu.memory_space<vmem>>, vector<32x32xbf16>
    %333 = arith.truncf %331 : vector<2x32xf32> to vector<2x32xbf16>
    %cst_148 = arith.constant dense<0.000000e+00> : vector<2x32xf32>
    %334 = tpu.matmul %333, %332, %cst_148 {dimension_numbers = #tpu.dot_dimension_numbers<[1], [0], [0], [1], [0, 0, 1, 1], [], []>} : vector<2x32xbf16>, vector<32x32xbf16>, vector<2x32xf32> -> vector<2x32xf32>
    %c0_149 = arith.constant 0 : index
    %c0_150 = arith.constant 0 : index
    %335 = vector.load %arg18[%c0_149, %c0_150] : memref<1x32xf32, #tpu.memory_space<vmem>>, vector<1x32xf32>
    %336 = vector.broadcast %335 : vector<1x32xf32> to vector<2x32xf32>
    %337 = arith.addf %334, %336 : vector<2x32xf32>
    %338 = math.tanh %337 : vector<2x32xf32>
    %339 = tpu.concatenate %338, %6 in 1 : vector<2x32xf32>, vector<2x32xf32> -> vector<2x64xf32>
    %c0_151 = arith.constant 0 : index
    %c0_152 = arith.constant 0 : index
    %340 = vector.load %arg21[%c0_151, %c0_152] : memref<64x1xbf16, #tpu.memory_space<vmem>>, vector<64x1xbf16>
    %341 = arith.truncf %339 : vector<2x64xf32> to vector<2x64xbf16>
    %cst_153 = arith.constant dense<0.000000e+00> : vector<2x1xf32>
    %342 = tpu.matmul %341, %340, %cst_153 {dimension_numbers = #tpu.dot_dimension_numbers<[1], [0], [0], [1], [0, 0, 1, 1], [], []>} : vector<2x64xbf16>, vector<64x1xbf16>, vector<2x1xf32> -> vector<2x1xf32>
    %c0_154 = arith.constant 0 : index
    %c0_155 = arith.constant 0 : index
    %343 = vector.load %arg22[%c0_154, %c0_155] : memref<1x1xf32, #tpu.memory_space<vmem>>, vector<1x1xf32>
    %344 = vector.broadcast %343 : vector<1x1xf32> to vector<2x1xf32>
    %345 = arith.addf %342, %344 : vector<2x1xf32>
    %c0_156 = arith.constant 0 : index
    %c0_157 = arith.constant 0 : index
    %346 = vector.load %arg23[%c0_156, %c0_157] : memref<2x1xf32, #tpu.memory_space<vmem>>, vector<2x1xf32>
    tpu.vector_store %arg23[%c0_156, %c0_157], %345 {strides = array<i32>} : memref<2x1xf32, #tpu.memory_space<vmem>>, vector<2x1xf32>,
    return
  }
}

</mosaic_0001>

<bundles_post_ra>
// kernel: bert_with_features.1
= control target key start
LH: loop header
LB: loop body
LE: loop exit
PB: predicated region body
PF: predicated region fallthrough
CT: control target
= control target key end

     0   :  { %vm139_vm0 = vcmask 261120   ;;  %v2687_v15 = vmov 0.0   ;;  %vm2688_vm1 = vmmov 0   ;;  %vm91_vm2 = vcmask 1041408   ;;  %s2689_s28 = smov 96   ;;  %s3300_s0 = inlined_call_operand.vmem [shape: f32[16,32], index: 0, kind: input, shape index: {}]   ;;  %s3301_s5 = inlined_call_operand.vmem [shape: bf16[2,32,96], index: 5, kind: input, shape index: {}]   ;;  %s3302_s3 = inlined_call_operand.vmem [shape: f32[1,32], index: 3, kind: input, shape index: {}]   ;;  %s3303_s4 = inlined_call_operand.vmem [shape: f32[1,32], index: 4, kind: input, shape index: {}]   ;;  %s3304_s19 = inlined_call_operand.vmem [shape: bf16[4,32], index: 19, kind: input, shape index: {}]   ;;  %s3305_s2 = inlined_call_operand.vmem [shape: f32[2,4], index: 2, kind: input, shape index: {}]   ;;  %s3306_s6 = inlined_call_operand.vmem [shape: f32[2,1,96], index: 6, kind: input, shape index: {}]   ;;  %s3307_s1 = inlined_call_operand.vmem [shape: f32[2,1,8], index: 1, kind: input, shape index: {}]   ;;  %s3308_s7 = inlined_call_operand.vmem [shape: bf16[2,32,32], index: 7, kind: input, shape index: {}]   ;;  %s3309_s8 = inlined_call_operand.vmem [shape: f32[2,1,32], index: 8, kind: input, shape index: {}]   ;;  %s3310_s11 = inlined_call_operand.vmem [shape: bf16[2,32,128], index: 11, kind: input, shape index: {}]   ;;  %s3311_s9 = inlined_call_operand.vmem [shape: f32[2,1,32], index: 9, kind: input, shape index: {}]   ;;  %s3312_s10 = inlined_call_operand.vmem [shape: f32[2,1,32], index: 10, kind: input, shape index: {}]   ;;  %s3313_s13 = inlined_call_operand.vmem [shape: bf16[2,128,32], index: 13, kind: input, shape index: {}]   ;;  %s3314_s12 = inlined_call_operand.vmem [shape: f32[2,1,128], index: 12, kind: input, shape index: {}]   ;;  %s3315_s14 = inlined_call_operand.vmem [shape: f32[2,1,32], index: 14, kind: input, shape index: {}]   ;;  %s3316_s15 = inlined_call_operand.vmem [shape: f32[2,1,32], index: 15, kind: input, shape index: {}]   ;;  %s3317_s16 = inlined_call_operand.vmem [shape: f32[2,1,32], index: 16, kind: input, shape index: {}]   ;;  %s3318_s20 = inlined_call_operand.vmem [shape: f32[1,32], index: 20, kind: input, shape index: {}]   ;;  %s3319_s17 = inlined_call_operand.vmem [shape: bf16[32,32], index: 17, kind: input, shape index: {}]   ;;  %s3320_s21 = inlined_call_operand.vmem [shape: bf16[64,1], index: 21, kind: input, shape index: {}]   ;;  %s3321_s22 = inlined_call_operand.<no memory space> [shape: f32[1,1], index: 22, kind: input, shape index: {}]   ;;  %s3322_s18 = inlined_call_operand.vmem [shape: f32[1,32], index: 18, kind: input, shape index: {}]   ;;  %s3323_s23 = inlined_call_operand.vmem [shape: f32[2,1], index: 23, kind: output, shape index: {}]  }
   0x1   :  { %3328 = sst [smem:[#allocation3_spill]] %s3300_s0  ;;  %2368 = vmatprep.subr.bf16.mxu1 %v2687_v15  ;;  %2362 = vmatprep.subr.bf16.mxu0 %v2687_v15  ;;  %vm87_vm3 = vcmask 31744   ;;  %vm261_vm4 = vcmask 130048   ;;  %vm372_vm5 = vcmask 64512   ;;  %vm402_vm6 = vcmask 1043456  }
   0x2   :  { %3329 = sst [smem:[#allocation4_spill]] %s3301_s5  ;;  %s3336_s24 = sld [smem:[#allocation3_spill]]  ;;  %2372 = vmatprep.mubr.msk.bf16.mxu1 %vm2688_vm1, %v2687_v15  ;;  %2364 = vmatprep.mubr.msk.bf16.mxu0 %vm2688_vm1, %v2687_v15  ;;  %vm2004_vm7 = vcmask 1041409   ;;  %vm2108_vm8 = vcmask 523264   ;;  %vm2152_vm9 = vcmask 1024  }
   0x3   :  { %3330 = sst [smem:[#allocation5_spill]] %s3302_s3  ;;  %s3337_s3 = sld [smem:[#allocation4_spill]] }
   0x4   :  { %3331 = sst [smem:[#allocation6_spill]] %s3303_s4  ;;  %s3338_s29 = sld [smem:[#allocation5_spill]] }
   0x5   :  { %3332 = sst [smem:[#allocation7_spill]] %s3304_s19  ;;  %s3339_s19 = sld [smem:[#allocation6_spill]] }
   0x6   :  { %3333 = sst [smem:[#allocation8_spill]] %s3305_s2  ;;  %s3340_s25 = sld [smem:[#allocation7_spill]] }
   0x7   :  { %3334 = sst [smem:[#allocation9_spill]] %s3306_s6  ;;  %s3341_s26 = sld [smem:[#allocation8_spill]] }
   0x8   :  { %3335 = sst [smem:[#allocation10_spill]] %s3307_s1  ;;  %v135_v0 = vld [vmem:[%s3336_s24] sm:$0xff]  ;;  %v136_v1 = vld [vmem:[%s3336_s24 + $0x8] sm:$0xff]  ;;  %s3342_s1 = sld [smem:[#allocation9_spill]] }
   0x9   :  { %v140_v2 = vsel %vm139_vm0, %v135_v0, 0.0  ;;  %v143_v3 = vsel %vm139_vm0, %v136_v1, 0.0  ;;  %v2591_v14 = vld [vmem:[%s3337_s3] sm:$0xff]   ;;  %v2592_v16 = vld [vmem:[%s3337_s3 + $0x8] sm:$0xff]   ;;  %s3343_s0 = sld [smem:[#allocation10_spill]]  ;;  %s2690_s24 = smov 64  }
   0xa   :  { %141 = vadd.xlane.f32.xlu0 %v140_v2  ;;  %2369 = vmatpush3.bf16.msra.mxu1 %v2591_v14  ;;  %v2160_v25 = vld [vmem:[%s3338_s29] ss:$0 sm:$0xff]  ;;  %s2692_s2 = smov 112   ;;  %s2693_s5 = smov 48  }
   0xb   :  { %2370 = vmatprep.subr.bf16.mxu1 %v2687_v15  ;;  %v2161_v29 = vld [vmem:[%s3339_s19] ss:$0 sm:$0xff]  ;;  %s2694_s4 = smov 16  }
   0xc   :  { %v78_v34 = vld [vmem:[%s3340_s25] sm:$0x3]  ;;  %s2691_s25 = smov 80  }
   0xd   :  { %v77_v35 = vld [vmem:[%s3341_s26] sm:$0x3]  ;;  %v93_v36 = vsel %vm91_vm2, %v78_v34, 0 }
   0xe   :  { %144 = vadd.xlane.f32.xlu0 %v143_v3  ;;  %2371 = vmatpush3.bf16.msra.mxu1 %v2592_v16  ;;  %v79_v37 = vpack.c.bf16 %v77_v35, %v77_v35  ;;  %v2162_v38 = vld [vmem:[%s3342_s1] ss:$0 sm:$0xff] }
   0xf   :  { %2382 = vmatprep.subr.bf16.mxu1 %v2687_v15  ;;  %2363 = vmatpush3.bf16.msra.mxu0 %v93_v36  ;;  %v2892_v56 = vld [vmem:[%s3343_s0] ss:$0 sm:$0xff]  ;;  %v2897_v61 = vld [vmem:[%s3343_s0 + $0x1] ss:$0 sm:$0xff]  ;;  %s2695_s0 = smov 32  }
  0x10   :  { %2376 = vmatprep.subr.bf16.mxu0 %v2687_v15 }
  0x12   :  { %2365 = vmatmul.mubr.msk.bf16.vlgmr.msra.gmra.mrb[0].mxu0 %vm87_vm3, %v79_v37 }
  0x13   :  { %2378 = vmatprep.mubr.msk.bf16.mxu0 %vm2688_vm1, %v2687_v15 }
  0x97   :  { %v142_v4 = vpop.xlane.xlu0 %141 }
  0x98   :  { %v147_v5 = vmul.f32 0.03125, %v142_v4 }
  0x9a   :  { %v149_v6 = vsub.f32 %v135_v0, %v147_v5 }
  0x9b   :  { %v145_v7 = vpop.xlane.xlu0 %144 }
  0x9c   :  { %v148_v8 = vmul.f32 0.03125, %v145_v7  ;;  %v151_v9 = vmul.f32 %v149_v6, %v149_v6 }
  0x9e   :  { %v150_v10 = vsub.f32 %v136_v1, %v148_v8  ;;  %v153_v11 = vsel %vm139_vm0, %v151_v9, 0.0 }
  0x9f   :  { %154 = vadd.xlane.f32.xlu1 %v153_v11 }
  0xa0   :  { %v152_v12 = vmul.f32 %v150_v10, %v150_v10 }
  0xa2   :  { %v156_v13 = vsel %vm139_vm0, %v152_v12, 0.0 }
  0xa3   :  { %157 = vadd.xlane.f32.xlu1 %v156_v13 }
  0xe5   :  { %v2875_v47 = vpop.f32.mrb[0].mxu0 }
  0xe6   :  { %v2366_v48 = vpop.f32.mrb[1].mxu0 }
  0xe7   :  { %v132_v49 = vpop.f32.mrb[2].mxu0 }
  0xe8   :  { %v2367_v50 = vpop.f32.mrb[3].mxu0 }
 0x12c   :  { %v155_v17 = vpop.xlane.xlu1 %154 }
 0x12d   :  { %v159_v18 = vmul.f32 0.03125, %v155_v17 }
 0x12f   :  { %v161_v19 = vadd.f32 1e-12, %v159_v18 }
 0x130   :  { %v158_v20 = vpop.xlane.xlu1 %157 }
 0x131   :  { %2625 = vrsqrt.f32 %v161_v19  ;;  %v160_v21 = vmul.f32 0.03125, %v158_v20 }
 0x133   :  { %v162_v22 = vadd.f32 1e-12, %v160_v21 }
 0x135   :  { %2627 = vrsqrt.f32 %v162_v22 }
 0x13b   :  { %v2626_v23 = vpop.eup %2625 }
 0x13c   :  { %v165_v24 = vmul.f32 %v2626_v23, %v149_v6 }
 0x13e   :  { %v173_v28 = vmul.f32 %v2160_v25, %v165_v24 }
 0x13f   :  { %v2628_v26 = vpop.eup %2627 }
 0x140   :  { %v166_v27 = vmul.f32 %v2628_v26, %v150_v10  ;;  %v2846_v31 = vadd.f32 %v2161_v29, %v173_v28 }
 0x142   :  { %v174_v30 = vmul.f32 %v2160_v25, %v166_v27 }
 0x144   :  { %v2848_v32 = vadd.f32 %v2161_v29, %v174_v30 }
 0x146   :  { %v189_v33 = vpack.c.bf16 %v2848_v32, %v2846_v31 }
 0x148   :  { %2373 = vmatmul.mubr.msk.bf16.vlgmr.msra.gmra.mrb[0].mxu1 %vm139_vm0, %v189_v33 }
 0x149   :  { %2384 = vmatprep.mubr.msk.bf16.mxu1 %vm2688_vm1, %v2687_v15 }
 0x21b   :  { %v246_v39 = vpop.f32.mrb[0].mxu1 }
 0x21c   :  { %v247_v40 = vadd.f32 %v2162_v38, %v246_v39  ;;  %v2374_v41 = vpop.f32.mrb[1].mxu1 }
 0x21d   :  { %v249_v42 = vpop.f32.mrb[2].mxu1 }
 0x21e   :  { %v2867_v43 = vpack.c.bf16 %v247_v40, %v247_v40  ;;  %v250_v44 = vadd.f32 %v2162_v38, %v249_v42  ;;  %v2375_v45 = vpop.f32.mrb[3].mxu1 }
 0x220   :  { %v2869_v46 = vpack.c.bf16 %v250_v44, %v250_v44  ;;  %259 = vrot.lane.b32.xlu0 %v2867_v43, %s2689_s28 }
 0x222   :  { %308 = vrot.lane.b32.xlu1 %v2869_v46, %s2689_s28 }
 0x292   :  { %v260_v51 = vpop.permute.xlu0 %259 }
 0x293   :  { %v266_v52 = vsel %vm261_vm4, %v260_v51, 0 }
 0x294   :  { %2377 = vmatpush3.bf16.xpose.msra.mxu0 %v266_v52  ;;  %v309_v53 = vpop.permute.xlu1 %308 }
 0x295   :  { %v314_v54 = vsel %vm261_vm4, %v309_v53, 0  ;;  %2388 = vmatprep.subr.bf16.mxu0 %v2687_v15 }
 0x296   :  { %2383 = vmatpush3.bf16.xpose.msra.mxu1 %v314_v54 }
 0x297   :  { %2394 = vmatprep.subr.bf16.mxu1 %v2687_v15 }
 0x29b   :  { %2379 = vmatmul.mubr.msk.bf16.vlgmr.msra.gmra.mrb[4].mxu0 %vm261_vm4, %v2867_v43 }
 0x29c   :  { %2390 = vmatprep.mubr.msk.bf16.mxu0 %vm2688_vm1, %v2687_v15 }
 0x29d   :  { %2385 = vmatmul.mubr.msk.bf16.vlgmr.msra.gmra.mrb[4].mxu1 %vm261_vm4, %v2869_v46 }
 0x29e   :  { %2396 = vmatprep.mubr.msk.bf16.mxu1 %vm2688_vm1, %v2687_v15 }
 0x36e   :  { %v302_v55 = vpop.f32.mrb[4].mxu0 }
 0x36f   :  { %v356_v57 = vmul.f32 0.25, %v302_v55  ;;  %v2380_v58 = vpop.f32.mrb[5].mxu0 }
 0x370   :  { %v305_v59 = vpop.f32.mrb[6].mxu0  ;;  %v350_v60 = vpop.f32.mrb[4].mxu1 }
 0x371   :  { %v357_v62 = vmul.f32 0.25, %v350_v60  ;;  %v2381_v63 = vpop.f32.mrb[7].mxu0  ;;  %v2386_v0 = vpop.f32.mrb[5].mxu1  ;;  %v370_v1 = vadd.f32 %v2892_v56, %v356_v57 }
 0x372   :  { %v353_v2 = vpop.f32.mrb[6].mxu1 }
 0x373   :  { %v2387_v3 = vpop.f32.mrb[7].mxu1  ;;  %v373_v4 = vsel %vm372_vm5, %v370_v1, -inf  ;;  %v371_v5 = vadd.f32 %v2897_v61, %v357_v62 }
 0x374   :  { %374 = vmax.xlane.f32.xlu1 %v373_v4 }
 0x375   :  { %v376_v6 = vsel %vm372_vm5, %v371_v5, -inf }
 0x376   :  { %377 = vmax.xlane.f32.xlu0 %v376_v6 }
 0x385   :  { %446 = vrot.lane.b32.xlu1 %v2869_v46, %s2690_s24 }
 0x389   :  { %496 = vrot.lane.b32.xlu1 %v2867_v43, %s2691_s25 }
 0x401   :  { %v375_v7 = vpop.xlane.xlu1 %374 }
 0x402   :  { %v379_v8 = vsub.f32 %v370_v1, %v375_v7 }
 0x403   :  { %v378_v9 = vpop.xlane.xlu0 %377 }
 0x404   :  { %v381_v10 = vmul.f32 1.442695, %v379_v8  ;;  %v380_v11 = vsub.f32 %v371_v5, %v378_v9 }
 0x405   :  { %v447_v12 = vpop.permute.xlu1 %446 }
 0x406   :  { %2629 = vpow2.f32 %v381_v10  ;;  %v383_v13 = vmul.f32 1.442695, %v380_v11  ;;  %v452_v14 = vsel %vm402_vm6, %v447_v12, 0 }
 0x407   :  { %2395 = vmatpush3.bf16.msra.mxu1 %v452_v14 }
 0x408   :  { %2631 = vpow2.f32 %v383_v13  ;;  %2406 = vmatprep.subr.bf16.mxu1 %v2687_v15 }
 0x409   :  { %v497_v20 = vpop.permute.xlu1 %496 }
 0x40a   :  { %v502_v33 = vsel %vm261_vm4, %v497_v20, 0 }
 0x410   :  { %v2630_v16 = vpop.eup %2629 }
 0x411   :  { %v385_v17 = vsel %vm372_vm5, %v2630_v16, 0.0 }
 0x412   :  { %v2632_v18 = vpop.eup %2631  ;;  %386 = vadd.xlane.f32.xlu0 %v385_v17 }
 0x413   :  { %v388_v19 = vsel %vm372_vm5, %v2632_v18, 0.0 }
 0x414   :  { %389 = vadd.xlane.f32.xlu1 %v388_v19 }
 0x425   :  { %546 = vrot.lane.b32.xlu1 %v2869_v46, %s2691_s25 }
 0x428   :  { %397 = vrot.lane.b32.xlu0 %v2867_v43, %s2690_s24 }
 0x429   :  { %544 = vrot.lane.b32.xlu1 %v2869_v46, %s2692_s2 }
 0x42c   :  { %494 = vrot.lane.b32.xlu0 %v2867_v43, %s2692_s2 }
 0x49f   :  { %v387_v21 = vpop.xlane.xlu0 %386 }
 0x4a0   :  { %2633 = vrcp.f32 %v387_v21 }
 0x4a1   :  { %v390_v22 = vpop.xlane.xlu1 %389 }
 0x4a2   :  { %2635 = vrcp.f32 %v390_v22  ;;  %v2593_v22 = vld [vmem:[%s3308_s7] sm:$0xff]  }
 0x4a3   :  { %v398_v23 = vpop.permute.xlu0 %397 }
 0x4a4   :  { %v404_v24 = vsel %vm402_vm6, %v398_v23, 0  ;;  %v2594_v23 = vld [vmem:[%s3308_s7 + $0x8] sm:$0xff]  }
 0x4a5   :  { %2389 = vmatpush3.bf16.msra.mxu0 %v404_v24  ;;  %v547_v30 = vpop.permute.xlu1 %546 }
 0x4a6   :  { %2400 = vmatprep.subr.bf16.mxu0 %v2687_v15  ;;  %v552_v35 = vsel %vm261_vm4, %v547_v30, 0 }
 0x4a7   :  { %v495_v36 = vpop.permute.xlu0 %494 }
 0x4a9   :  { %v545_v37 = vpop.permute.xlu1 %544 }
 0x4aa   :  { %v2634_v25 = vpop.eup %2633 }
 0x4ab   :  { %v393_v26 = vmul.f32 %v2634_v25, %v2630_v16 }
 0x4ac   :  { %v2636_v27 = vpop.eup %2635 }
 0x4ad   :  { %v394_v28 = vmul.f32 %v2636_v27, %v2632_v18  ;;  %v395_v29 = vpack.c.bf16 %v393_v26, %v393_v26 }
 0x4af   :  { %2391 = vmatmul.mubr.msk.bf16.vlgmr.msra.gmra.mrb[8].mxu0 %vm372_vm5, %v395_v29  ;;  %v396_v34 = vpack.c.bf16 %v394_v28, %v394_v28 }
 0x4b0   :  { %2401 = vmatpush3.bf16.xpose.msra.mxu0 %v502_v33  ;;  %2402 = vmatprep.mubr.msk.bf16.mxu0 %vm2688_vm1, %v2687_v15 }
 0x4b1   :  { %2397 = vmatmul.mubr.msk.bf16.vlgmr.msra.gmra.mrb[8].mxu1 %vm372_vm5, %v396_v34  ;;  %2412 = vmatprep.subr.bf16.mxu0 %v2687_v15 }
 0x4b2   :  { %2407 = vmatpush3.bf16.xpose.msra.mxu1 %v552_v35  ;;  %2408 = vmatprep.mubr.msk.bf16.mxu1 %vm2688_vm1, %v2687_v15 }
 0x4b3   :  { %2418 = vmatprep.subr.bf16.mxu1 %v2687_v15 }
 0x4b7   :  { %2403 = vmatmul.mubr.msk.bf16.vlgmr.msra.gmra.mrb[12].mxu0 %vm261_vm4, %v495_v36 }
 0x4b8   :  { %2414 = vmatprep.mubr.msk.bf16.mxu0 %vm2688_vm1, %v2687_v15 }
 0x4b9   :  { %2409 = vmatmul.mubr.msk.bf16.vlgmr.msra.gmra.mrb[12].mxu1 %vm261_vm4, %v545_v37 }
 0x4ba   :  { %2420 = vmatprep.mubr.msk.bf16.mxu1 %vm2688_vm1, %v2687_v15 }
 0x582   :  { %v2937_v38 = vpop.f32.mrb[8].mxu0 }
 0x583   :  { %v2392_v39 = vpop.f32.mrb[9].mxu0 }
 0x584   :  { %v443_v40 = vpop.f32.mrb[10].mxu0  ;;  %v2939_v41 = vpop.f32.mrb[8].mxu1 }
 0x585   :  { %v2393_v42 = vpop.f32.mrb[11].mxu0  ;;  %v2398_v44 = vpop.f32.mrb[9].mxu1 }
 0x586   :  { %v491_v45 = vpop.f32.mrb[10].mxu1  ;;  %v2178_v44 = vld [vmem:[%s3309_s8] ss:$0 sm:$0xff] }
 0x587   :  { %v2399_v48 = vpop.f32.mrb[11].mxu1 }
 0x58a   :  { %v538_v49 = vpop.f32.mrb[12].mxu0 }
 0x58b   :  { %v594_v50 = vmul.f32 0.25, %v538_v49  ;;  %v2404_v51 = vpop.f32.mrb[13].mxu0 }
 0x58c   :  { %v541_v52 = vpop.f32.mrb[14].mxu0  ;;  %v588_v53 = vpop.f32.mrb[12].mxu1 }
 0x58d   :  { %v595_v54 = vmul.f32 0.25, %v588_v53  ;;  %v2405_v55 = vpop.f32.mrb[15].mxu0  ;;  %v2410_v57 = vpop.f32.mrb[13].mxu1  ;;  %v596_v58 = vadd.f32 %v2892_v56, %v594_v50 }
 0x58e   :  { %v591_v59 = vpop.f32.mrb[14].mxu1 }
 0x58f   :  { %v2411_v60 = vpop.f32.mrb[15].mxu1  ;;  %v598_v62 = vsel %vm372_vm5, %v596_v58, -inf  ;;  %v597_v63 = vadd.f32 %v2897_v61, %v595_v54 }
 0x590   :  { %599 = vmax.xlane.f32.xlu0 %v598_v62 }
 0x591   :  { %v601_v0 = vsel %vm372_vm5, %v597_v63, -inf }
 0x592   :  { %602 = vmax.xlane.f32.xlu1 %v601_v0 }
 0x5a3   :  { %670 = vrot.lane.b32.xlu1 %v2869_v46, %s2693_s5 }
 0x61d   :  { %v600_v1 = vpop.xlane.xlu0 %599 }
 0x61e   :  { %v604_v2 = vsub.f32 %v596_v58, %v600_v1 }
 0x61f   :  { %v603_v3 = vpop.xlane.xlu1 %602 }
 0x620   :  { %v606_v4 = vmul.f32 1.442695, %v604_v2  ;;  %v605_v5 = vsub.f32 %v597_v63, %v603_v3  ;;  %v2596_v2 = vld [vmem:[%s3310_s11 + $0x8] sm:$0xff]  }
 0x622   :  { %2637 = vpow2.f32 %v606_v4  ;;  %v608_v6 = vmul.f32 1.442695, %v605_v5 }
 0x623   :  { %v671_v7 = vpop.permute.xlu1 %670 }
 0x624   :  { %2639 = vpow2.f32 %v608_v6  ;;  %v676_v8 = vsel %vm402_vm6, %v671_v7, 0 }
 0x625   :  { %2419 = vmatpush3.bf16.msra.mxu1 %v676_v8 }
 0x626   :  { %2432 = vmatprep.subr.bf16.mxu1 %v2687_v15 }
 0x62c   :  { %v2638_v9 = vpop.eup %2637 }
 0x62d   :  { %v610_v10 = vsel %vm372_vm5, %v2638_v9, 0.0 }
 0x62e   :  { %v2640_v11 = vpop.eup %2639  ;;  %611 = vadd.xlane.f32.xlu0 %v610_v10 }
 0x62f   :  { %v613_v46 = vsel %vm372_vm5, %v2640_v11, 0.0 }
 0x632   :  { %614 = vadd.xlane.f32.xlu0 %v613_v46 }
 0x648   :  { %622 = vrot.lane.b32.xlu0 %v2867_v43, %s2693_s5 }
 0x6bb   :  { %v612_v12 = vpop.xlane.xlu0 %611 }
 0x6bc   :  { %2641 = vrcp.f32 %v612_v12 }
 0x6bf   :  { %v615_v13 = vpop.xlane.xlu0 %614 }
 0x6c0   :  { %2643 = vrcp.f32 %v615_v13 }
 0x6c3   :  { %v623_v14 = vpop.permute.xlu0 %622 }
 0x6c4   :  { %v628_v16 = vsel %vm402_vm6, %v623_v14, 0  ;;  %v2183_v14 = vld [vmem:[%s3312_s10] ss:$0 sm:$0xff] }
 0x6c5   :  { %2413 = vmatpush3.bf16.msra.mxu0 %v628_v16 }
 0x6c6   :  { %v2642_v17 = vpop.eup %2641  ;;  %2424 = vmatprep.subr.bf16.mxu0 %v2687_v15 }
 0x6c7   :  { %v618_v18 = vmul.f32 %v2642_v17, %v2638_v9 }
 0x6c9   :  { %v620_v19 = vpack.c.bf16 %v618_v18, %v618_v18 }
 0x6ca   :  { %v2644_v20 = vpop.eup %2643 }
 0x6cb   :  { %v619_v21 = vmul.f32 %v2644_v20, %v2640_v11  ;;  %2415 = vmatmul.mubr.msk.bf16.vlgmr.msra.gmra.mrb[16].mxu0 %vm372_vm5, %v620_v19  ;;  %v2182_v11 = vld [vmem:[%s3311_s9] ss:$0 sm:$0xff] }
 0x6cc   :  { %2428 = vmatprep.mubr.msk.bf16.mxu0 %vm2688_vm1, %v2687_v15  ;;  %2425 = vmatpush3.bf16.msra.mxu0 %v2593_v22  ;;  %v2597_v20 = vld [vmem:[%s3313_s13] sm:$0xff]   ;;  %v2600_v22 = vld [vmem:[%s3313_s13 + $0x18] sm:$0xff]  }
 0x6cd   :  { %v621_v43 = vpack.c.bf16 %v619_v21, %v619_v21  ;;  %2426 = vmatprep.subr.bf16.mxu0 %v2687_v15  ;;  %v2598_v21 = vld [vmem:[%s3313_s13 + $0x8] sm:$0xff]  }
 0x6cf   :  { %2421 = vmatmul.mubr.msk.bf16.vlgmr.msra.gmra.mrb[16].mxu1 %vm372_vm5, %v621_v43  ;;  %v2599_v43 = vld [vmem:[%s3313_s13 + $0x10] sm:$0xff]  }
 0x6d0   :  { %2436 = vmatprep.mubr.msk.bf16.mxu1 %vm2688_vm1, %v2687_v15  ;;  %2427 = vmatpush3.bf16.msra.mxu0 %v2594_v23  ;;  %v2601_v23 = vld [vmem:[%s3313_s13 + $0x20] sm:$0xff]  }
 0x6d1   :  { %2440 = vmatprep.subr.bf16.mxu0 %v2687_v15 }
 0x79e   :  { %v664_v24 = vpop.f32.mrb[16].mxu0 }
 0x79f   :  { %v2416_v25 = vpop.f32.mrb[17].mxu0 }
 0x7a0   :  { %v667_v26 = vpop.f32.mrb[18].mxu0  ;;  %v2603_v25 = vld [vmem:[%s3313_s13 + $0x30] sm:$0xff]  }
 0x7a1   :  { %v2417_v27 = vpop.f32.mrb[19].mxu0  ;;  %v2604_v26 = vld [vmem:[%s3313_s13 + $0x38] sm:$0xff]  }
 0x7a2   :  { %v712_v28 = vpop.f32.mrb[16].mxu1  ;;  %v2184_v27 = vld [vmem:[%s3314_s12] ss:$0 sm:$0xff] }
 0x7a3   :  { %v2581_v29 = vpack.i.bf16 %v712_v28, %v664_v24  ;;  %v2422_v30 = vpop.f32.mrb[17].mxu1  ;;  %v2602_v24 = vld [vmem:[%s3313_s13 + $0x28] sm:$0xff]  }
 0x7a4   :  { %v715_v33 = vpop.f32.mrb[18].mxu1 }
 0x7a5   :  { %2582 = vrot.lane.b32.xlu1 %v2581_v29, %s2694_s4  ;;  %v2423_v34 = vpop.f32.mrb[19].mxu1 }
 0x817   :  { %v2583_v35 = vpop.permute.xlu1 %2582 }
 0x818   :  { %v2585_v36 = vunpack.i.h.bf16 %v2583_v35  ;;  %v2584_v37 = vunpack.i.l.bf16 %v2583_v35 }
 0x81a   :  { %v727_v39 = vsel %vm261_vm4, %v2939_v41, %v2585_v36  ;;  %v726_v40 = vsel %vm261_vm4, %v2937_v38, %v2584_v37 }
 0x81b   :  { %v732_v42 = vpack.c.bf16 %v727_v39, %v726_v40 }
 0x81d   :  { %2429 = vmatmul.mubr.msk.bf16.vlgmr.msra.gmra.mrb[20].mxu0 %vm139_vm0, %v732_v42 }
 0x81e   :  { %2456 = vmatprep.mubr.msk.bf16.mxu0 %vm2688_vm1, %v2687_v15  ;;  %2441 = vmatpush3.bf16.msra.mxu0 %v2597_v20 }
 0x81f   :  { %2442 = vmatprep.subr.bf16.mxu0 %v2687_v15 }
 0x822   :  { %2443 = vmatpush3.bf16.msra.mxu0 %v2598_v21 }
 0x823   :  { %2444 = vmatprep.subr.bf16.mxu0 %v2687_v15 }
 0x826   :  { %2445 = vmatpush3.bf16.msra.mxu0 %v2599_v43 }
 0x827   :  { %2446 = vmatprep.subr.bf16.mxu0 %v2687_v15 }
 0x82a   :  { %2447 = vmatpush3.bf16.msra.mxu0 %v2600_v22 }
 0x82b   :  { %2448 = vmatprep.subr.bf16.mxu0 %v2687_v15 }
 0x82e   :  { %2449 = vmatpush3.bf16.msra.mxu0 %v2601_v23  ;;  %v2197_v23 = vld [vmem:[%s3316_s15] ss:$0 sm:$0xff] }
 0x82f   :  { %2450 = vmatprep.subr.bf16.mxu0 %v2687_v15 }
 0x832   :  { %2451 = vmatpush3.bf16.msra.mxu0 %v2602_v24 }
 0x833   :  { %2452 = vmatprep.subr.bf16.mxu0 %v2687_v15 }
 0x836   :  { %2453 = vmatpush3.bf16.msra.mxu0 %v2603_v25 }
 0x837   :  { %2454 = vmatprep.subr.bf16.mxu0 %v2687_v15 }
 0x83a   :  { %2455 = vmatpush3.bf16.msra.mxu0 %v2604_v26 }
 0x83b   :  { %2486 = vmatprep.subr.bf16.mxu0 %v2687_v15 }
 0x8f0   :  { %v789_v45 = vpop.f32.mrb[20].mxu0 }
 0x8f1   :  { %v790_v48 = vadd.f32 %v2178_v44, %v789_v45  ;;  %v2430_v49 = vpop.f32.mrb[21].mxu0 }
 0x8f2   :  { %v792_v50 = vpop.f32.mrb[22].mxu0 }
 0x8f3   :  { %v793_v51 = vadd.f32 %v2178_v44, %v792_v50  ;;  %v2431_v52 = vpop.f32.mrb[23].mxu0  ;;  %v796_v41 = vadd.f32 %v790_v48, %v2846_v31 }
 0x8f5   :  { %v800_v38 = vsel %vm139_vm0, %v796_v41, 0.0  ;;  %v797_v53 = vadd.f32 %v793_v51, %v2848_v32  ;;  %v2595_v32 = vld [vmem:[%s3310_s11] sm:$0xff]  }
 0x8f6   :  { %801 = vadd.xlane.f32.xlu1 %v800_v38  ;;  %2433 = vmatpush3.bf16.msra.mxu1 %v2595_v32 }
 0x8f7   :  { %v803_v54 = vsel %vm139_vm0, %v797_v53, 0.0  ;;  %2434 = vmatprep.subr.bf16.mxu1 %v2687_v15 }
 0x8f8   :  { %804 = vadd.xlane.f32.xlu0 %v803_v54 }
 0x8fa   :  { %2435 = vmatpush3.bf16.msra.mxu1 %v2596_v2 }
 0x8fb   :  { %2460 = vmatprep.subr.bf16.mxu1 %v2687_v15 }
 0x983   :  { %v802_v55 = vpop.xlane.xlu1 %801 }
 0x984   :  { %v806_v57 = vmul.f32 0.03125, %v802_v55 }
 0x985   :  { %v805_v58 = vpop.xlane.xlu0 %804 }
 0x986   :  { %v808_v59 = vsub.f32 %v796_v41, %v806_v57  ;;  %v807_v60 = vmul.f32 0.03125, %v805_v58 }
 0x988   :  { %v809_v62 = vsub.f32 %v797_v53, %v807_v60  ;;  %v810_v63 = vmul.f32 %v808_v59, %v808_v59 }
 0x98a   :  { %v812_v0 = vsel %vm139_vm0, %v810_v63, 0.0  ;;  %v811_v1 = vmul.f32 %v809_v62, %v809_v62 }
 0x98b   :  { %813 = vadd.xlane.f32.xlu0 %v812_v0 }
 0x98c   :  { %v815_v31 = vsel %vm139_vm0, %v811_v1, 0.0 }
 0x98f   :  { %816 = vadd.xlane.f32.xlu0 %v815_v31 }
 0xa18   :  { %v814_v3 = vpop.xlane.xlu0 %813 }
 0xa19   :  { %v818_v4 = vmul.f32 0.03125, %v814_v3 }
 0xa1b   :  { %v820_v5 = vadd.f32 1e-12, %v818_v4 }
 0xa1c   :  { %v817_v6 = vpop.xlane.xlu0 %816 }
 0xa1d   :  { %2645 = vrsqrt.f32 %v820_v5  ;;  %v819_v7 = vmul.f32 0.03125, %v817_v6 }
 0xa1f   :  { %v821_v8 = vadd.f32 1e-12, %v819_v7 }
 0xa21   :  { %2647 = vrsqrt.f32 %v821_v8 }
 0xa27   :  { %v2646_v9 = vpop.eup %2645 }
 0xa28   :  { %v824_v10 = vmul.f32 %v2646_v9, %v808_v59  ;;  %v2188_v59 = vld [vmem:[%s3315_s14] ss:$0 sm:$0xff] }
 0xa2a   :  { %v832_v12 = vmul.f32 %v2182_v11, %v824_v10 }
 0xa2b   :  { %v2648_v46 = vpop.eup %2647 }
 0xa2c   :  { %v825_v13 = vmul.f32 %v2648_v46, %v809_v62  ;;  %v3000_v17 = vadd.f32 %v2183_v14, %v832_v12 }
 0xa2e   :  { %v833_v16 = vmul.f32 %v2182_v11, %v825_v13 }
 0xa30   :  { %v3002_v18 = vadd.f32 %v2183_v14, %v833_v16  ;;  %v2605_v14 = vld [vmem:[%s3337_s3 + $0x10] sm:$0xff]   ;;  %v2606_v16 = vld [vmem:[%s3337_s3 + $0x18] sm:$0xff]  }
 0xa32   :  { %v846_v19 = vpack.c.bf16 %v3002_v18, %v3000_v17 }
 0xa34   :  { %2437 = vmatmul.mubr.msk.bf16.vlgmr.msra.gmra.mrb[20].mxu1 %vm139_vm0, %v846_v19 }
 0xa35   :  { %2464 = vmatprep.mubr.msk.bf16.mxu1 %vm2688_vm1, %v2687_v15  ;;  %2461 = vmatpush3.bf16.msra.mxu1 %v2605_v14 }
 0xa36   :  { %2462 = vmatprep.subr.bf16.mxu1 %v2687_v15 }
 0xa39   :  { %2463 = vmatpush3.bf16.msra.mxu1 %v2606_v16 }
 0xa3a   :  { %2468 = vmatprep.subr.bf16.mxu1 %v2687_v15 }
 0xb07   :  { %v903_v28 = vpop.f32.mrb[20].mxu1 }
 0xb08   :  { %v904_v29 = vadd.f32 %v2184_v27, %v903_v28  ;;  %v2438_v30 = vpop.f32.mrb[21].mxu1  ;;  %v2198_v28 = vld [vmem:[%s3317_s16] ss:$0 sm:$0xff] }
 0xb09   :  { %v906_v33 = vpop.f32.mrb[22].mxu1 }
 0xb0a   :  { %v910_v34 = vmul.f32 %v904_v29, %v904_v29  ;;  %v907_v35 = vadd.f32 %v2184_v27, %v906_v33  ;;  %v2439_v36 = vpop.f32.mrb[23].mxu1 }
 0xb0c   :  { %v912_v37 = vmul.f32 %v910_v34, %v904_v29  ;;  %v911_v39 = vmul.f32 %v907_v35, %v907_v35 }
 0xb0e   :  { %v914_v40 = vmul.f32 0.044715, %v912_v37  ;;  %v913_v42 = vmul.f32 %v911_v39, %v907_v35 }
 0xb10   :  { %v916_v44 = vadd.f32 %v914_v40, %v904_v29  ;;  %v915_v45 = vmul.f32 0.044715, %v913_v42 }
 0xb12   :  { %v918_v48 = vmul.f32 0.7978846, %v916_v44  ;;  %v917_v49 = vadd.f32 %v915_v45, %v907_v35 }
 0xb14   :  { %2649 = vtanh.f32 %v918_v48  ;;  %v919_v50 = vmul.f32 0.7978846, %v917_v49 }
 0xb16   :  { %2651 = vtanh.f32 %v919_v50 }
 0xb1e   :  { %v2650_v51 = vpop.eup %2649 }
 0xb1f   :  { %v922_v52 = vadd.f32 1.0, %v2650_v51 }
 0xb20   :  { %v2652_v41 = vpop.eup %2651 }
 0xb21   :  { %v924_v38 = vmul.f32 0.5, %v922_v52  ;;  %v923_v53 = vadd.f32 1.0, %v2652_v41 }
 0xb23   :  { %v925_v54 = vmul.f32 0.5, %v923_v53  ;;  %v926_v55 = vmul.f32 %v924_v38, %v904_v29 }
 0xb25   :  { %v927_v57 = vmul.f32 %v925_v54, %v907_v35  ;;  %v2204_v35 = vld [vmem:[%s3342_s1 + $0x1] ss:$0 sm:$0xff] }
 0xb27   :  { %v944_v58 = vpack.c.bf16 %v927_v57, %v926_v55 }
 0xb29   :  { %2457 = vmatmul.mubr.bf16.vlgmr.msra.gmra.mrb[24].mxu0 %v944_v58 }
 0xb2a   :  { %2488 = vmatprep.mubr.msk.bf16.mxu0 %vm2688_vm1, %v2687_v15 }
 0xbfc   :  { %v1034_v60 = vpop.f32.mrb[24].mxu0 }
 0xbfd   :  { %v1035_v62 = vadd.f32 %v2188_v59, %v1034_v60  ;;  %v2458_v63 = vpop.f32.mrb[25].mxu0 }
 0xbfe   :  { %v1037_v0 = vpop.f32.mrb[26].mxu0 }
 0xbff   :  { %v1038_v1 = vadd.f32 %v2188_v59, %v1037_v0  ;;  %v2459_v31 = vpop.f32.mrb[27].mxu0  ;;  %v1041_v32 = vadd.f32 %v1035_v62, %v3000_v17 }
 0xc01   :  { %v1045_v2 = vsel %vm139_vm0, %v1041_v32, 0.0  ;;  %v1042_v3 = vadd.f32 %v1038_v1, %v3002_v18 }
 0xc02   :  { %1046 = vadd.xlane.f32.xlu1 %v1045_v2 }
 0xc03   :  { %v1048_v4 = vsel %vm139_vm0, %v1042_v3, 0.0 }
 0xc04   :  { %1049 = vadd.xlane.f32.xlu0 %v1048_v4 }
 0xc8f   :  { %v1047_v5 = vpop.xlane.xlu1 %1046 }
 0xc90   :  { %v1051_v6 = vmul.f32 0.03125, %v1047_v5 }
 0xc91   :  { %v1050_v7 = vpop.xlane.xlu0 %1049 }
 0xc92   :  { %v1053_v8 = vsub.f32 %v1041_v32, %v1051_v6  ;;  %v1052_v9 = vmul.f32 0.03125, %v1050_v7 }
 0xc94   :  { %v1054_v10 = vsub.f32 %v1042_v3, %v1052_v9  ;;  %v1055_v11 = vmul.f32 %v1053_v8, %v1053_v8 }
 0xc96   :  { %v1057_v46 = vsel %vm139_vm0, %v1055_v11, 0.0  ;;  %v1056_v12 = vmul.f32 %v1054_v10, %v1054_v10 }
 0xc97   :  { %1058 = vadd.xlane.f32.xlu1 %v1057_v46 }
 0xc98   :  { %v1060_v13 = vsel %vm139_vm0, %v1056_v12, 0.0 }
 0xc99   :  { %1061 = vadd.xlane.f32.xlu0 %v1060_v13 }
 0xd24   :  { %v1059_v17 = vpop.xlane.xlu1 %1058 }
 0xd25   :  { %v1063_v18 = vmul.f32 0.03125, %v1059_v17 }
 0xd26   :  { %v1062_v19 = vpop.xlane.xlu0 %1061 }
 0xd27   :  { %v1065_v20 = vadd.f32 1e-12, %v1063_v18  ;;  %v1064_v21 = vmul.f32 0.03125, %v1062_v19 }
 0xd29   :  { %2653 = vrsqrt.f32 %v1065_v20  ;;  %v1066_v43 = vadd.f32 1e-12, %v1064_v21 }
 0xd2b   :  { %2655 = vrsqrt.f32 %v1066_v43 }
 0xd33   :  { %v2654_v22 = vpop.eup %2653 }
 0xd34   :  { %v1069_v24 = vmul.f32 %v2654_v22, %v1053_v8 }
 0xd35   :  { %v2656_v25 = vpop.eup %2655 }
 0xd36   :  { %v1077_v26 = vmul.f32 %v2197_v23, %v1069_v24  ;;  %v1070_v27 = vmul.f32 %v2656_v25, %v1054_v10 }
 0xd38   :  { %v1078_v29 = vmul.f32 %v2197_v23, %v1070_v27  ;;  %v3069_v30 = vadd.f32 %v2198_v28, %v1077_v26 }
 0xd3a   :  { %v3071_v33 = vadd.f32 %v2198_v28, %v1078_v29 }
 0xd3c   :  { %v1092_v34 = vpack.c.bf16 %v3071_v33, %v3069_v30 }
 0xd3e   :  { %2465 = vmatmul.mubr.msk.bf16.vlgmr.msra.gmra.mrb[24].mxu1 %vm139_vm0, %v1092_v34 }
 0xd3f   :  { %2470 = vmatprep.mubr.msk.bf16.mxu1 %vm2688_vm1, %v2687_v15 }
 0xe11   :  { %v1150_v36 = vpop.f32.mrb[24].mxu1 }
 0xe12   :  { %v1151_v37 = vadd.f32 %v2204_v35, %v1150_v36  ;;  %v2466_v39 = vpop.f32.mrb[25].mxu1 }
 0xe13   :  { %v1153_v40 = vpop.f32.mrb[26].mxu1 }
 0xe14   :  { %v3081_v42 = vpack.c.bf16 %v1151_v37, %v1151_v37  ;;  %v1154_v44 = vadd.f32 %v2204_v35, %v1153_v40  ;;  %v2467_v45 = vpop.f32.mrb[27].mxu1 }
 0xe16   :  { %v3083_v48 = vpack.c.bf16 %v1154_v44, %v1154_v44  ;;  %1163 = vrot.lane.b32.xlu1 %v3081_v42, %s2689_s28 }
 0xe18   :  { %1211 = vrot.lane.b32.xlu0 %v3083_v48, %s2689_s28 }
 0xe88   :  { %v1164_v49 = vpop.permute.xlu1 %1163 }
 0xe89   :  { %v1169_v50 = vsel %vm261_vm4, %v1164_v49, 0 }
 0xe8a   :  { %2469 = vmatpush3.bf16.xpose.msra.mxu1 %v1169_v50  ;;  %v1212_v51 = vpop.permute.xlu0 %1211 }
 0xe8b   :  { %2474 = vmatprep.subr.bf16.mxu1 %v2687_v15  ;;  %v1217_v52 = vsel %vm261_vm4, %v1212_v51, 0 }
 0xe91   :  { %2471 = vmatmul.mubr.msk.bf16.vlgmr.msra.gmra.mrb[28].mxu1 %vm261_vm4, %v3081_v42 }
 0xe92   :  { %2475 = vmatpush3.bf16.xpose.msra.mxu1 %v1217_v52  ;;  %2476 = vmatprep.mubr.msk.bf16.mxu1 %vm2688_vm1, %v2687_v15 }
 0xe93   :  { %2480 = vmatprep.subr.bf16.mxu1 %v2687_v15 }
 0xe99   :  { %2477 = vmatmul.mubr.msk.bf16.vlgmr.msra.gmra.mrb[32].mxu1 %vm261_vm4, %v3083_v48 }
 0xe9a   :  { %2482 = vmatprep.mubr.msk.bf16.mxu1 %vm2688_vm1, %v2687_v15 }
 0xf64   :  { %v1205_v41 = vpop.f32.mrb[28].mxu1 }
 0xf65   :  { %v1259_v38 = vmul.f32 0.25, %v1205_v41  ;;  %v2472_v53 = vpop.f32.mrb[29].mxu1 }
 0xf66   :  { %v1208_v54 = vpop.f32.mrb[30].mxu1 }
 0xf67   :  { %v2473_v55 = vpop.f32.mrb[31].mxu1  ;;  %v1261_v57 = vadd.f32 %v2892_v56, %v1259_v38 }
 0xf69   :  { %v1263_v58 = vsel %vm372_vm5, %v1261_v57, -inf }
 0xf6a   :  { %1264 = vmax.xlane.f32.xlu1 %v1263_v58 }
 0xf6c   :  { %v1253_v59 = vpop.f32.mrb[32].mxu1 }
 0xf6d   :  { %v1260_v60 = vmul.f32 0.25, %v1253_v59  ;;  %v2478_v62 = vpop.f32.mrb[33].mxu1 }
 0xf6e   :  { %v1256_v63 = vpop.f32.mrb[34].mxu1 }
 0xf6f   :  { %v2479_v0 = vpop.f32.mrb[35].mxu1  ;;  %v1262_v1 = vadd.f32 %v2897_v61, %v1260_v60 }
 0xf71   :  { %v1266_v31 = vsel %vm372_vm5, %v1262_v1, -inf }
 0xf72   :  { %1267 = vmax.xlane.f32.xlu0 %v1266_v31 }
 0xf7b   :  { %1287 = vrot.lane.b32.xlu1 %v3081_v42, %s2690_s24 }
 0xff7   :  { %v1265_v32 = vpop.xlane.xlu1 %1264 }
 0xff8   :  { %v1269_v2 = vsub.f32 %v1261_v57, %v1265_v32 }
 0xffa   :  { %v1271_v3 = vmul.f32 1.442695, %v1269_v2 }
 0xffb   :  { %v1288_v4 = vpop.permute.xlu1 %1287 }
 0xffc   :  { %2657 = vpow2.f32 %v1271_v3  ;;  %v1293_v5 = vsel %vm402_vm6, %v1288_v4, 0 }
 0xffd   :  { %2481 = vmatpush3.bf16.msra.mxu1 %v1293_v5 }
 0xffe   :  { %2492 = vmatprep.subr.bf16.mxu1 %v2687_v15 }
 0xfff   :  { %v1268_v6 = vpop.xlane.xlu0 %1267 }
0x1000   :  { %v1270_v7 = vsub.f32 %v1262_v1, %v1268_v6 }
0x1002   :  { %v1273_v8 = vmul.f32 1.442695, %v1270_v7 }
0x1004   :  { %2659 = vpow2.f32 %v1273_v8 }
0x1006   :  { %v2658_v9 = vpop.eup %2657 }
0x1007   :  { %v1275_v10 = vsel %vm372_vm5, %v2658_v9, 0.0 }
0x1008   :  { %1276 = vadd.xlane.f32.xlu1 %v1275_v10 }
0x100e   :  { %v2660_v11 = vpop.eup %2659 }
0x100f   :  { %v1278_v46 = vsel %vm372_vm5, %v2660_v11, 0.0 }
0x1010   :  { %1279 = vadd.xlane.f32.xlu0 %v1278_v46 }
0x1019   :  { %1385 = vrot.lane.b32.xlu1 %v3081_v42, %s2691_s25 }
0x101d   :  { %1435 = vrot.lane.b32.xlu1 %v3083_v48, %s2691_s25 }
0x1021   :  { %1383 = vrot.lane.b32.xlu1 %v3081_v42, %s2692_s2 }
0x1026   :  { %1335 = vrot.lane.b32.xlu0 %v3083_v48, %s2690_s24 }
0x102a   :  { %1433 = vrot.lane.b32.xlu0 %v3083_v48, %s2692_s2 }
0x1095   :  { %v1277_v12 = vpop.xlane.xlu1 %1276 }
0x1096   :  { %2661 = vrcp.f32 %v1277_v12  ;;  %v2607_v12 = vld [vmem:[%s3308_s7 + $0x10] sm:$0xff]  }
0x1099   :  { %v1386_v16 = vpop.permute.xlu1 %1385 }
0x109a   :  { %v1391_v21 = vsel %vm261_vm4, %v1386_v16, 0 }
0x109d   :  { %v1280_v13 = vpop.xlane.xlu0 %1279  ;;  %v1436_v43 = vpop.permute.xlu1 %1435 }
0x109e   :  { %2663 = vrcp.f32 %v1280_v13  ;;  %v1441_v26 = vsel %vm261_vm4, %v1436_v43, 0  ;;  %v2608_v13 = vld [vmem:[%s3308_s7 + $0x18] sm:$0xff]  }
0x10a0   :  { %v2662_v14 = vpop.eup %2661 }
0x10a1   :  { %v1283_v17 = vmul.f32 %v2662_v14, %v2658_v9  ;;  %v1336_v18 = vpop.permute.xlu0 %1335  ;;  %v1384_v25 = vpop.permute.xlu1 %1383 }
0x10a2   :  { %v1341_v19 = vsel %vm402_vm6, %v1336_v18, 0 }
0x10a3   :  { %2487 = vmatpush3.bf16.msra.mxu0 %v1341_v19  ;;  %v1285_v20 = vpack.c.bf16 %v1283_v17, %v1283_v17 }
0x10a4   :  { %2498 = vmatprep.subr.bf16.mxu0 %v2687_v15 }
0x10a5   :  { %2483 = vmatmul.mubr.msk.bf16.vlgmr.msra.gmra.mrb[36].mxu1 %vm372_vm5, %v1285_v20  ;;  %v1434_v27 = vpop.permute.xlu0 %1433 }
0x10a6   :  { %2493 = vmatpush3.bf16.xpose.msra.mxu1 %v1391_v21  ;;  %2494 = vmatprep.mubr.msk.bf16.mxu1 %vm2688_vm1, %v2687_v15 }
0x10a7   :  { %2504 = vmatprep.subr.bf16.mxu1 %v2687_v15 }
0x10a8   :  { %v2664_v22 = vpop.eup %2663 }
0x10a9   :  { %v1284_v23 = vmul.f32 %v2664_v22, %v2660_v11 }
0x10ab   :  { %v1286_v24 = vpack.c.bf16 %v1284_v23, %v1284_v23 }
0x10ad   :  { %2489 = vmatmul.mubr.msk.bf16.vlgmr.msra.gmra.mrb[28].mxu0 %vm372_vm5, %v1286_v24  ;;  %2495 = vmatmul.mubr.msk.bf16.vlgmr.msra.gmra.mrb[40].mxu1 %vm261_vm4, %v1384_v25 }
0x10ae   :  { %2499 = vmatpush3.bf16.xpose.msra.mxu0 %v1441_v26  ;;  %2500 = vmatprep.mubr.msk.bf16.mxu0 %vm2688_vm1, %v2687_v15 }
0x10af   :  { %2510 = vmatprep.subr.bf16.mxu0 %v2687_v15  ;;  %2506 = vmatprep.mubr.msk.bf16.mxu1 %vm2688_vm1, %v2687_v15 }
0x10b5   :  { %2501 = vmatmul.mubr.msk.bf16.vlgmr.msra.gmra.mrb[32].mxu0 %vm261_vm4, %v1434_v27 }
0x10b6   :  { %2512 = vmatprep.mubr.msk.bf16.mxu0 %vm2688_vm1, %v2687_v15 }
0x1178   :  { %v3139_v28 = vpop.f32.mrb[36].mxu1 }
0x1179   :  { %v2484_v29 = vpop.f32.mrb[37].mxu1 }
0x117a   :  { %v1332_v34 = vpop.f32.mrb[38].mxu1 }
0x117b   :  { %v2485_v35 = vpop.f32.mrb[39].mxu1  ;;  %v2223_v34 = vld [vmem:[%s3309_s8 + $0x1] ss:$0 sm:$0xff] }
0x1180   :  { %v3141_v36 = vpop.f32.mrb[28].mxu0  ;;  %v1427_v37 = vpop.f32.mrb[40].mxu1 }
0x1181   :  { %v1483_v39 = vmul.f32 0.25, %v1427_v37  ;;  %v2490_v40 = vpop.f32.mrb[29].mxu0  ;;  %v2496_v44 = vpop.f32.mrb[41].mxu1 }
0x1182   :  { %v1380_v45 = vpop.f32.mrb[30].mxu0  ;;  %v1430_v49 = vpop.f32.mrb[42].mxu1 }
0x1183   :  { %v2491_v50 = vpop.f32.mrb[31].mxu0  ;;  %v2497_v51 = vpop.f32.mrb[43].mxu1  ;;  %v1485_v52 = vadd.f32 %v2892_v56, %v1483_v39 }
0x1185   :  { %v1487_v41 = vsel %vm372_vm5, %v1485_v52, -inf }
0x1186   :  { %1488 = vmax.xlane.f32.xlu1 %v1487_v41 }
0x1188   :  { %v1477_v38 = vpop.f32.mrb[32].mxu0 }
0x1189   :  { %v1484_v53 = vmul.f32 0.25, %v1477_v38  ;;  %v2502_v54 = vpop.f32.mrb[33].mxu0 }
0x118a   :  { %v1480_v55 = vpop.f32.mrb[34].mxu0 }
0x118b   :  { %v2503_v57 = vpop.f32.mrb[35].mxu0  ;;  %v1486_v58 = vadd.f32 %v2897_v61, %v1484_v53 }
0x118d   :  { %v1490_v59 = vsel %vm372_vm5, %v1486_v58, -inf }
0x118e   :  { %1491 = vmax.xlane.f32.xlu0 %v1490_v59  ;;  %v2610_v59 = vld [vmem:[%s3310_s11 + $0x18] sm:$0xff]  }
0x1197   :  { %1511 = vrot.lane.b32.xlu1 %v3081_v42, %s2693_s5 }
0x1213   :  { %v1489_v60 = vpop.xlane.xlu1 %1488 }
0x1214   :  { %v1493_v62 = vsub.f32 %v1485_v52, %v1489_v60 }
0x1216   :  { %v1495_v63 = vmul.f32 1.442695, %v1493_v62 }
0x1217   :  { %v1512_v56 = vpop.permute.xlu1 %1511 }
0x1218   :  { %2665 = vpow2.f32 %v1495_v63  ;;  %v1517_v0 = vsel %vm402_vm6, %v1512_v56, 0 }
0x1219   :  { %2505 = vmatpush3.bf16.msra.mxu1 %v1517_v0 }
0x121a   :  { %2516 = vmatprep.subr.bf16.mxu1 %v2687_v15 }
0x121b   :  { %v1492_v1 = vpop.xlane.xlu0 %1491 }
0x121c   :  { %v1494_v31 = vsub.f32 %v1486_v58, %v1492_v1 }
0x121e   :  { %v1497_v32 = vmul.f32 1.442695, %v1494_v31 }
0x1220   :  { %2667 = vpow2.f32 %v1497_v32  ;;  %v2229_v32 = vld [vmem:[%s3311_s9 + $0x1] ss:$0 sm:$0xff] }
0x1222   :  { %v2666_v61 = vpop.eup %2665 }
0x1223   :  { %v1499_v2 = vsel %vm372_vm5, %v2666_v61, 0.0 }
0x1224   :  { %1500 = vadd.xlane.f32.xlu0 %v1499_v2 }
0x122a   :  { %v2668_v3 = vpop.eup %2667 }
0x122b   :  { %v1502_v42 = vsel %vm372_vm5, %v2668_v3, 0.0 }
0x122c   :  { %1503 = vadd.xlane.f32.xlu0 %v1502_v42 }
0x1242   :  { %1559 = vrot.lane.b32.xlu0 %v3083_v48, %s2693_s5 }
0x12b1   :  { %v1501_v4 = vpop.xlane.xlu0 %1500 }
0x12b2   :  { %2669 = vrcp.f32 %v1501_v4  ;;  %v2230_v4 = vld [vmem:[%s3312_s10 + $0x1] ss:$0 sm:$0xff] }
0x12b9   :  { %v1504_v5 = vpop.xlane.xlu0 %1503 }
0x12ba   :  { %2671 = vrcp.f32 %v1504_v5 }
0x12bc   :  { %v2670_v6 = vpop.eup %2669 }
0x12bd   :  { %v1507_v7 = vmul.f32 %v2670_v6, %v2666_v61  ;;  %v1560_v8 = vpop.permute.xlu0 %1559 }
0x12be   :  { %v1565_v9 = vsel %vm402_vm6, %v1560_v8, 0 }
0x12bf   :  { %2511 = vmatpush3.bf16.msra.mxu0 %v1565_v9  ;;  %v1509_v10 = vpack.c.bf16 %v1507_v7, %v1507_v7  ;;  %v2611_v9 = vld [vmem:[%s3313_s13 + $0x40] sm:$0xff]  }
0x12c0   :  { %2524 = vmatprep.subr.bf16.mxu0 %v2687_v15 }
0x12c1   :  { %2507 = vmatmul.mubr.msk.bf16.vlgmr.msra.gmra.mrb[44].mxu1 %vm372_vm5, %v1509_v10  ;;  %v2612_v10 = vld [vmem:[%s3313_s13 + $0x48] sm:$0xff]  }
0x12c2   :  { %2520 = vmatprep.mubr.msk.bf16.mxu1 %vm2688_vm1, %v2687_v15  ;;  %2517 = vmatpush3.bf16.msra.mxu1 %v2607_v12  ;;  %v2616_v12 = vld [vmem:[%s3313_s13 + $0x68] sm:$0xff]  }
0x12c3   :  { %2518 = vmatprep.subr.bf16.mxu1 %v2687_v15 }
0x12c4   :  { %v2672_v11 = vpop.eup %2671 }
0x12c5   :  { %v1508_v48 = vmul.f32 %v2672_v11, %v2668_v3  ;;  %v2613_v11 = vld [vmem:[%s3313_s13 + $0x50] sm:$0xff]  }
0x12c6   :  { %2519 = vmatpush3.bf16.msra.mxu1 %v2608_v13  ;;  %v2617_v13 = vld [vmem:[%s3313_s13 + $0x70] sm:$0xff]  }
0x12c7   :  { %v1510_v46 = vpack.c.bf16 %v1508_v48, %v1508_v48  ;;  %2532 = vmatprep.subr.bf16.mxu1 %v2687_v15  ;;  %v2614_v48 = vld [vmem:[%s3313_s13 + $0x58] sm:$0xff]  }
0x12c9   :  { %2513 = vmatmul.mubr.msk.bf16.vlgmr.msra.gmra.mrb[36].mxu0 %vm372_vm5, %v1510_v46  ;;  %v2615_v46 = vld [vmem:[%s3313_s13 + $0x60] sm:$0xff]  }
0x12ca   :  { %2528 = vmatprep.mubr.msk.bf16.mxu0 %vm2688_vm1, %v2687_v15 }
0x1394   :  { %v1553_v14 = vpop.f32.mrb[44].mxu1 }
0x1395   :  { %v2508_v16 = vpop.f32.mrb[45].mxu1 }
0x1396   :  { %v1556_v17 = vpop.f32.mrb[46].mxu1  ;;  %v2236_v16 = vld [vmem:[%s3314_s12 + $0x1] ss:$0 sm:$0xff] }
0x1397   :  { %v2509_v18 = vpop.f32.mrb[47].mxu1 }
0x139c   :  { %v1601_v19 = vpop.f32.mrb[36].mxu0 }
0x139d   :  { %v2586_v20 = vpack.i.bf16 %v1601_v19, %v1553_v14  ;;  %v2514_v21 = vpop.f32.mrb[37].mxu0  ;;  %v2618_v14 = vld [vmem:[%s3313_s13 + $0x78] sm:$0xff]  }
0x139e   :  { %v1604_v43 = vpop.f32.mrb[38].mxu0 }
0x139f   :  { %v2515_v22 = vpop.f32.mrb[39].mxu0  ;;  %2587 = vrot.lane.b32.xlu1 %v2586_v20, %s2694_s4 }
0x1411   :  { %v2588_v23 = vpop.permute.xlu1 %2587 }
0x1412   :  { %v2590_v24 = vunpack.i.h.bf16 %v2588_v23  ;;  %v2589_v25 = vunpack.i.l.bf16 %v2588_v23 }
0x1414   :  { %v1616_v26 = vsel %vm261_vm4, %v3141_v36, %v2590_v24  ;;  %v1615_v27 = vsel %vm261_vm4, %v3139_v28, %v2589_v25 }
0x1415   :  { %v1622_v29 = vpack.c.bf16 %v1616_v26, %v1615_v27 }
0x1417   :  { %2521 = vmatmul.mubr.msk.bf16.vlgmr.msra.gmra.mrb[48].mxu1 %vm139_vm0, %v1622_v29 }
0x1418   :  { %2548 = vmatprep.mubr.msk.bf16.mxu1 %vm2688_vm1, %v2687_v15  ;;  %2533 = vmatpush3.bf16.msra.mxu1 %v2611_v9 }
0x1419   :  { %2534 = vmatprep.subr.bf16.mxu1 %v2687_v15 }
0x141c   :  { %2535 = vmatpush3.bf16.msra.mxu1 %v2612_v10 }
0x141d   :  { %2536 = vmatprep.subr.bf16.mxu1 %v2687_v15 }
0x1420   :  { %2537 = vmatpush3.bf16.msra.mxu1 %v2613_v11 }
0x1421   :  { %2538 = vmatprep.subr.bf16.mxu1 %v2687_v15 }
0x1424   :  { %2539 = vmatpush3.bf16.msra.mxu1 %v2614_v48  ;;  %v2268_v48 = vld [vmem:[%s3316_s15 + $0x1] ss:$0 sm:$0xff] }
0x1425   :  { %2540 = vmatprep.subr.bf16.mxu1 %v2687_v15 }
0x1428   :  { %2541 = vmatpush3.bf16.msra.mxu1 %v2615_v46 }
0x1429   :  { %2542 = vmatprep.subr.bf16.mxu1 %v2687_v15 }
0x142c   :  { %2543 = vmatpush3.bf16.msra.mxu1 %v2616_v12 }
0x142d   :  { %2544 = vmatprep.subr.bf16.mxu1 %v2687_v15 }
0x1430   :  { %2545 = vmatpush3.bf16.msra.mxu1 %v2617_v13  ;;  %v2269_v13 = vld [vmem:[%s3317_s16 + $0x1] ss:$0 sm:$0xff] }
0x1431   :  { %2546 = vmatprep.subr.bf16.mxu1 %v2687_v15 }
0x1434   :  { %2547 = vmatpush3.bf16.msra.mxu1 %v2618_v14 }
0x14ea   :  { %v1680_v35 = vpop.f32.mrb[48].mxu1 }
0x14eb   :  { %v1681_v37 = vadd.f32 %v2223_v34, %v1680_v35  ;;  %v2522_v39 = vpop.f32.mrb[49].mxu1 }
0x14ec   :  { %v1683_v40 = vpop.f32.mrb[50].mxu1 }
0x14ed   :  { %v1684_v44 = vadd.f32 %v2223_v34, %v1683_v40  ;;  %v2523_v45 = vpop.f32.mrb[51].mxu1  ;;  %v1687_v36 = vadd.f32 %v1681_v37, %v3069_v30 }
0x14ef   :  { %v1693_v28 = vsel %vm139_vm0, %v1687_v36, 0.0  ;;  %v1688_v49 = vadd.f32 %v1684_v44, %v3071_v33  ;;  %v2609_v33 = vld [vmem:[%s3310_s11 + $0x10] sm:$0xff]  }
0x14f0   :  { %1694 = vadd.xlane.f32.xlu1 %v1693_v28  ;;  %2525 = vmatpush3.bf16.msra.mxu0 %v2609_v33 }
0x14f1   :  { %v1696_v50 = vsel %vm139_vm0, %v1688_v49, 0.0  ;;  %2526 = vmatprep.subr.bf16.mxu0 %v2687_v15 }
0x14f2   :  { %1697 = vadd.xlane.f32.xlu0 %v1696_v50 }
0x14f4   :  { %2527 = vmatpush3.bf16.msra.mxu0 %v2610_v59 }
0x14f5   :  { %2552 = vmatprep.subr.bf16.mxu0 %v2687_v15 }
0x157d   :  { %v1695_v51 = vpop.xlane.xlu1 %1694 }
0x157e   :  { %v1699_v52 = vmul.f32 0.03125, %v1695_v51 }
0x157f   :  { %v1698_v41 = vpop.xlane.xlu0 %1697 }
0x1580   :  { %v1701_v38 = vsub.f32 %v1687_v36, %v1699_v52  ;;  %v1700_v53 = vmul.f32 0.03125, %v1698_v41  ;;  %v2257_v52 = vld [vmem:[%s3315_s14 + $0x1] ss:$0 sm:$0xff] }
0x1582   :  { %v1702_v54 = vsub.f32 %v1688_v49, %v1700_v53  ;;  %v1703_v55 = vmul.f32 %v1701_v38, %v1701_v38 }
0x1584   :  { %v1705_v57 = vsel %vm139_vm0, %v1703_v55, 0.0  ;;  %v1704_v58 = vmul.f32 %v1702_v54, %v1702_v54 }
0x1585   :  { %1706 = vadd.xlane.f32.xlu0 %v1705_v57 }
0x1586   :  { %v1708_v30 = vsel %vm139_vm0, %v1704_v58, 0.0 }
0x1587   :  { %1709 = vadd.xlane.f32.xlu1 %v1708_v30 }
0x1612   :  { %v1707_v60 = vpop.xlane.xlu0 %1706 }
0x1613   :  { %v1711_v62 = vmul.f32 0.03125, %v1707_v60 }
0x1614   :  { %v1710_v63 = vpop.xlane.xlu1 %1709 }
0x1615   :  { %v1713_v56 = vadd.f32 1e-12, %v1711_v62  ;;  %v1712_v0 = vmul.f32 0.03125, %v1710_v63 }
0x1617   :  { %2673 = vrsqrt.f32 %v1713_v56  ;;  %v1714_v1 = vadd.f32 1e-12, %v1712_v0 }
0x1619   :  { %2675 = vrsqrt.f32 %v1714_v1 }
0x1621   :  { %v2674_v31 = vpop.eup %2673 }
0x1622   :  { %v1717_v61 = vmul.f32 %v2674_v31, %v1701_v38 }
0x1623   :  { %v2676_v2 = vpop.eup %2675 }
0x1624   :  { %v1725_v3 = vmul.f32 %v2229_v32, %v1717_v61  ;;  %v1718_v42 = vmul.f32 %v2676_v2, %v1702_v54 }
0x1626   :  { %v1726_v5 = vmul.f32 %v2229_v32, %v1718_v42  ;;  %v3202_v6 = vadd.f32 %v2230_v4, %v1725_v3  ;;  %v2158_v3 = vld [vmem:[%s3318_s20] ss:$0 sm:$0xff] }
0x1627   :  { %v130_v42 = vadd.f32 %v2158_v3, %v2875_v47 }
0x1628   :  { %v3204_v7 = vadd.f32 %v2230_v4, %v1726_v5  ;;  %v2619_v4 = vld [vmem:[%s3319_s17] sm:$0xff]   ;;  %v2620_v5 = vld [vmem:[%s3319_s17 + $0x8] sm:$0xff]  }
0x162a   :  { %v1740_v8 = vpack.c.bf16 %v3204_v7, %v3202_v6 }
0x162c   :  { %2529 = vmatmul.mubr.msk.bf16.vlgmr.msra.gmra.mrb[40].mxu0 %vm139_vm0, %v1740_v8 }
0x162d   :  { %2556 = vmatprep.mubr.msk.bf16.mxu0 %vm2688_vm1, %v2687_v15  ;;  %2553 = vmatpush3.bf16.msra.mxu0 %v2619_v4 }
0x162e   :  { %2554 = vmatprep.subr.bf16.mxu0 %v2687_v15 }
0x1631   :  { %2555 = vmatpush3.bf16.msra.mxu0 %v2620_v5 }
0x1632   :  { %2560 = vmatprep.subr.bf16.mxu0 %v2687_v15 }
0x16ff   :  { %v1798_v17 = vpop.f32.mrb[40].mxu0 }
0x1700   :  { %v1799_v18 = vadd.f32 %v2236_v16, %v1798_v17  ;;  %v2530_v19 = vpop.f32.mrb[41].mxu0 }
0x1701   :  { %v1801_v20 = vpop.f32.mrb[42].mxu0 }
0x1702   :  { %v1805_v21 = vmul.f32 %v1799_v18, %v1799_v18  ;;  %v1802_v43 = vadd.f32 %v2236_v16, %v1801_v20  ;;  %v2531_v22 = vpop.f32.mrb[43].mxu0 }
0x1704   :  { %v1807_v23 = vmul.f32 %v1805_v21, %v1799_v18  ;;  %v1806_v24 = vmul.f32 %v1802_v43, %v1802_v43 }
0x1706   :  { %v1809_v25 = vmul.f32 0.044715, %v1807_v23  ;;  %v1808_v26 = vmul.f32 %v1806_v24, %v1802_v43 }
0x1708   :  { %v1811_v27 = vadd.f32 %v1809_v25, %v1799_v18  ;;  %v1810_v29 = vmul.f32 0.044715, %v1808_v26  ;;  %v2621_v26 = vld [vmem:[%s3320_s21] sm:$0xff]  }
0x170a   :  { %v1813_v34 = vmul.f32 0.7978846, %v1811_v27  ;;  %v1812_v35 = vadd.f32 %v1810_v29, %v1802_v43  ;;  %v2622_v27 = vld [vmem:[%s3320_s21 + $0x8] sm:$0xff]   ;;  %v2623_v29 = vld [vmem:[%s3320_s21 + $0x10] sm:$0xff]  }
0x170c   :  { %2677 = vtanh.f32 %v1813_v34  ;;  %v1814_v37 = vmul.f32 0.7978846, %v1812_v35  ;;  %v2624_v34 = vld [vmem:[%s3320_s21 + $0x18] sm:$0xff]   ;;  %v28_v35 = vstv %s3321_s22 }
0x170d   :  { %29 = vst [vmem:[#allocation2] sm:$0x1] %v28_v35 }
0x170e   :  { %2679 = vtanh.f32 %v1814_v37  ;;  %v2270_v37 = vld [vmem:[%s3322_s18] ss:$0 sm:$0xff] }
0x1716   :  { %v2678_v39 = vpop.eup %2677 }
0x1717   :  { %v1817_v40 = vadd.f32 1.0, %v2678_v39 }
0x1718   :  { %v2680_v44 = vpop.eup %2679 }
0x1719   :  { %v1819_v45 = vmul.f32 0.5, %v1817_v40  ;;  %v1818_v36 = vadd.f32 1.0, %v2680_v44 }
0x171b   :  { %v1820_v28 = vmul.f32 0.5, %v1818_v36  ;;  %v1821_v49 = vmul.f32 %v1819_v45, %v1799_v18 }
0x171d   :  { %v1822_v50 = vmul.f32 %v1820_v28, %v1802_v43 }
0x171f   :  { %v1840_v51 = vpack.c.bf16 %v1822_v50, %v1821_v49 }
0x1721   :  { %2549 = vmatmul.mubr.bf16.vlgmr.msra.gmra.mrb[52].mxu1 %v1840_v51  ;;  %v2274_v51 = vld [vmem:[#allocation2] ss:$0 sm:$0xff] }
0x17f4   :  { %v1931_v41 = vpop.f32.mrb[52].mxu1 }
0x17f5   :  { %v1932_v38 = vadd.f32 %v2257_v52, %v1931_v41  ;;  %v2550_v53 = vpop.f32.mrb[53].mxu1 }
0x17f6   :  { %v1934_v54 = vpop.f32.mrb[54].mxu1 }
0x17f7   :  { %v1935_v55 = vadd.f32 %v2257_v52, %v1934_v54  ;;  %v2551_v57 = vpop.f32.mrb[55].mxu1  ;;  %v1938_v58 = vadd.f32 %v1932_v38, %v3202_v6 }
0x17f9   :  { %v1944_v30 = vsel %vm139_vm0, %v1938_v58, 0.0  ;;  %v1939_v33 = vadd.f32 %v1935_v55, %v3204_v7 }
0x17fa   :  { %1945 = vadd.xlane.f32.xlu1 %v1944_v30 }
0x17fb   :  { %v1947_v59 = vsel %vm139_vm0, %v1939_v33, 0.0 }
0x17fc   :  { %1948 = vadd.xlane.f32.xlu0 %v1947_v59 }
0x1887   :  { %v1946_v60 = vpop.xlane.xlu1 %1945 }
0x1888   :  { %v1950_v62 = vmul.f32 0.03125, %v1946_v60 }
0x1889   :  { %v1949_v63 = vpop.xlane.xlu0 %1948 }
0x188a   :  { %v1952_v56 = vsub.f32 %v1938_v58, %v1950_v62  ;;  %v1951_v0 = vmul.f32 0.03125, %v1949_v63 }
0x188c   :  { %v1953_v1 = vsub.f32 %v1939_v33, %v1951_v0  ;;  %v1954_v31 = vmul.f32 %v1952_v56, %v1952_v56 }
0x188e   :  { %v1956_v32 = vsel %vm139_vm0, %v1954_v31, 0.0  ;;  %v1955_v61 = vmul.f32 %v1953_v1, %v1953_v1 }
0x188f   :  { %1957 = vadd.xlane.f32.xlu1 %v1956_v32 }
0x1890   :  { %v1959_v2 = vsel %vm139_vm0, %v1955_v61, 0.0 }
0x1891   :  { %1960 = vadd.xlane.f32.xlu0 %v1959_v2 }
0x18a7   :  { %2064 = vrot.lane.b32.xlu0 %v130_v42, %s2695_s0 }
0x191c   :  { %v1958_v6 = vpop.xlane.xlu1 %1957 }
0x191d   :  { %v1962_v7 = vmul.f32 0.03125, %v1958_v6 }
0x191e   :  { %v1961_v8 = vpop.xlane.xlu0 %1960 }
0x191f   :  { %v1964_v47 = vadd.f32 1e-12, %v1962_v7  ;;  %v1963_v9 = vmul.f32 0.03125, %v1961_v8 }
0x1921   :  { %2681 = vrsqrt.f32 %v1964_v47  ;;  %v1965_v10 = vadd.f32 1e-12, %v1963_v9 }
0x1922   :  { %v2065_v49 = vpop.permute.xlu0 %2064 }
0x1923   :  { %2683 = vrsqrt.f32 %v1965_v10 }
0x192b   :  { %v2682_v11 = vpop.eup %2681 }
0x192c   :  { %v1968_v46 = vmul.f32 %v2682_v11, %v1952_v56 }
0x192d   :  { %v2684_v12 = vpop.eup %2683 }
0x192e   :  { %v1976_v14 = vmul.f32 %v2268_v48, %v1968_v46  ;;  %v1969_v16 = vmul.f32 %v2684_v12, %v1953_v1 }
0x1930   :  { %v1984_v17 = vadd.f32 %v2269_v13, %v1976_v14  ;;  %v1977_v18 = vmul.f32 %v2268_v48, %v1969_v16 }
0x1932   :  { %v1985_v19 = vadd.f32 %v2269_v13, %v1977_v18  ;;  %v1990_v20 = vpack.c.bf16 %v1984_v17, %v1984_v17 }
0x1934   :  { %v1991_v21 = vpack.c.bf16 %v1985_v19, %v1985_v19  ;;  %v2001_v22 = vunpack.c.l.b16 %v1990_v20 }
0x1936   :  { %v2002_v43 = vunpack.c.l.b16 %v1991_v21 }
0x1938   :  { %v2003_v23 = vrot.slane %v2002_v43, 7 }
0x193a   :  { %v2005_v24 = vsel %vm2004_vm7, %v2003_v23, %v2001_v22 }
0x193b   :  { %v2006_v25 = vpack.c.b16 %v2005_v24, %v2005_v24 }
0x193d   :  { %2557 = vmatmul.mubr.msk.bf16.vlgmr.msra.gmra.mrb[44].mxu0 %vm139_vm0, %v2006_v25 }
0x193e   :  { %2568 = vmatprep.mubr.msk.bf16.mxu0 %vm2688_vm1, %v2687_v15  ;;  %2561 = vmatpush3.bf16.msra.mxu0 %v2621_v26 }
0x193f   :  { %2562 = vmatprep.subr.bf16.mxu0 %v2687_v15 }
0x1942   :  { %2563 = vmatpush3.bf16.msra.mxu0 %v2622_v27 }
0x1943   :  { %2564 = vmatprep.subr.bf16.mxu0 %v2687_v15 }
0x1946   :  { %2565 = vmatpush3.bf16.msra.mxu0 %v2623_v29 }
0x1947   :  { %2566 = vmatprep.subr.bf16.mxu0 %v2687_v15 }
0x194a   :  { %2567 = vmatpush3.bf16.msra.mxu0 %v2624_v34 }
0x1a10   :  { %v2056_v39 = vpop.f32.mrb[44].mxu0 }
0x1a11   :  { %v2057_v40 = vadd.f32 %v2270_v37, %v2056_v39  ;;  %v2558_v44 = vpop.f32.mrb[45].mxu0 }
0x1a12   :  { %v2059_v45 = vpop.f32.mrb[46].mxu0 }
0x1a13   :  { %2685 = vtanh.f32 %v2057_v40  ;;  %v2559_v36 = vpop.f32.mrb[47].mxu0 }
0x1a1d   :  { %v2686_v28 = vpop.eup %2685 }
0x1a1e   :  { %v2067_v15 = vsel %vm139_vm0, %v2686_v28, %v2065_v49 }
0x1a1f   :  { %v2076_v50 = vpack.c.bf16 %v2067_v15, %v2067_v15 }
0x1a21   :  { %2569 = vmatmul.mubr.msk.bf16.vlgmr.msra.gmra.mrb[48].mxu0 %vm2108_vm8, %v2076_v50 }
0x1af4   :  { %v2146_v52 = vpop.f32.mrb[48].mxu0 }
0x1af5   :  { %v2147_v41 = vadd.f32 %v2274_v51, %v2146_v52  ;;  %v2570_v38 = vpop.f32.mrb[49].mxu0 }
0x1af6   :  { %v2149_v53 = vpop.f32.mrb[50].mxu0 }
0x1af7   :  { %2153 = vst.msk [vmem:[%s3323_s23] sm:$0x3] %vm2152_vm9, %v2147_v41  ;;  %v2571_v54 = vpop.f32.mrb[51].mxu0 }

</bundles_post_ra>
